<compile_context>
chip_gen: v7x
topology: tpu7x:2x2x1
jax: 0.10.0
libtpu: 0.0.40
codegen_flags: <defaults>
</compile_context>

<pallas_src>
import functools

import jax
import jax.numpy as jnp
from jax import lax
from jax.experimental import pallas as pl
from jax.experimental.pallas import tpu as pltpu


def _round_up(x, m):
    return ((x + m - 1) // m) * m


# ----------------------------------------------------------------------------
# Pallas kernel: fused embedding + bidirectional LSTM + collapsed linear head.
# Everything is tiny, so every operand is a whole-array VMEM block and the
# grid is a single point.
# ----------------------------------------------------------------------------
def _omniglot_kernel(ids_ref,          # (S*Bp, 2) int32: [fwd_id, V + rev_id]
                     wa_ref,           # (PV + 2H, 8H): [P_fwd;P_rev (padded) ; Whh]
                     wb_ref,           # (2H + 1, Npad): [W_final ; b_final]
                     out_ref,          # (Bp, Npad)
                     *, seq_len, batch_p, use_bf16):
    gate_w = wa_ref.shape[1]           # 8*H = 512 (grouped gates, each 2H wide)
    hidden2 = gate_w // 4              # 2*H = 128 ([fwd | rev] concatenated)
    pv = wa_ref.shape[0] - hidden2     # padded 2*vocab rows of the P table
    sbp = seq_len * batch_p
    dt = jnp.bfloat16 if use_bf16 else jnp.float32

    # ---- embedding lookup + input projection + fwd/rev pre-sum: ONE MXU op --
    # Row r = t*Bp + b of the combined one-hot selects P_fwd[x[b,t]] and
    # P_rev[x[b,S-1-t]] (gate bias is folded into P_fwd, added once per step).
    ids = ids_ref[...]                                           # (S*Bp, 2)
    iota = lax.broadcasted_iota(jnp.int32, (sbp, pv), 1)
    onehot = jnp.logical_or(ids[:, 0:1] == iota, ids[:, 1:2] == iota)
    onehot = onehot.astype(jnp.float32).astype(dt)               # exact in bf16
    p = wa_ref[0:pv, :].astype(dt)                               # (PV, 8H)
    gsum = jnp.dot(onehot, p, preferred_element_type=jnp.float32)  # (S*Bp, 8H)

    whh = wa_ref[pv:pv + hidden2, :].astype(dt)                  # (2H, 8H)

    # ---- fused bidirectional recurrence (fully unrolled) --------------------
    # Gate column layout (each block 2H wide, fwd half then rev half):
    #   [ i | f | o | g ]  -> sigmoids on one contiguous 384-lane slice.
    h = jnp.zeros((batch_p, hidden2), jnp.float32)               # [h_fwd|h_rev]
    c = jnp.zeros((batch_p, hidden2), jnp.float32)               # [c_fwd|c_rev]
    for t in range(seq_len):
        gates = gsum[t * batch_p:(t + 1) * batch_p, :] + jnp.dot(
            h.astype(dt), whh, preferred_element_type=jnp.float32)
        ifo = 0.5 * jnp.tanh(0.5 * gates[:, :3 * hidden2]) + 0.5  # sigmoid(x)
        g = jnp.tanh(gates[:, 3 * hidden2:])
        i = ifo[:, 0 * hidden2:1 * hidden2]
        f = ifo[:, 1 * hidden2:2 * hidden2]
        o = ifo[:, 2 * hidden2:3 * hidden2]
        c = f * c + i * g
        h = o * jnp.tanh(c)

    # SimpleLSTM's "hidden" is cat(c_n[fwd], c_n[rev]) because of the (c, h)
    # unpack swap -> that is exactly our carried c = [c_fwd | c_rev].
    # fc -> net_out -> net_shared collapsed into one affine map (f32).
    w_final = wb_ref[0:hidden2, :]                               # (2H, Npad)
    b_final = wb_ref[hidden2:hidden2 + 1, :]                     # (1, Npad)
    out_ref[...] = jnp.dot(c, w_final,
                           preferred_element_type=jnp.float32) + b_final


# ----------------------------------------------------------------------------
# One-time weight preparation: grouped/fused weight blobs.
#   gate layout (width 8H): [i_f,i_r | f_f,f_r | o_f,o_r | g_f,g_r]
# ----------------------------------------------------------------------------
def fuse_params(params):
    hidden = params["whh_f"].shape[0]
    vocab = params["emb"].shape[0]
    perm = (0, 1, 3, 2)   # source gate order [i,f,g,o] -> dest blocks [i,f,o,g]

    def place_cols(w, half):
        """Scatter the [i,f,g,o] gate blocks (each H wide) of `w` into the
        8H-wide grouped layout; `half`=0 -> fwd slots, 1 -> rev slots."""
        out = jnp.zeros((w.shape[0], 8 * hidden), jnp.float32)
        for k in range(4):
            dst = perm[k] * 2 * hidden + half * hidden
            out = out.at[:, dst:dst + hidden].set(
                w[:, k * hidden:(k + 1) * hidden])
        return out

    wih_f_g = place_cols(params["wih_f"], 0)                      # (E, 8H)
    wih_r_g = place_cols(params["wih_r"], 1)                      # (E, 8H)
    b_g = place_cols(params["b_f"], 0) + place_cols(params["b_r"], 1)  # (1,8H)

    # Block-diagonal recurrent matrix: rows 0:H fed by h_fwd, rows H:2H by h_rev.
    whh_g = jnp.concatenate([place_cols(params["whh_f"], 0),
                             place_cols(params["whh_r"], 1)], axis=0)  # (2H,8H)

    # Pre-projected embedding table; gate bias folded into the fwd half so it
    # is added exactly once per timestep (each combined one-hot row selects
    # exactly one fwd row and one rev row).
    emb = params["emb"].astype(jnp.float32)
    p_fwd = emb @ wih_f_g + b_g                                   # (V, 8H)
    p_rev = emb @ wih_r_g                                         # (V, 8H)
    p_stack = jnp.concatenate([p_fwd, p_rev], axis=0)             # (2V, 8H)
    pv = _round_up(2 * vocab, 8)
    p_stack = jnp.pad(p_stack, ((0, pv - 2 * vocab), (0, 0)))

    wa = jnp.concatenate([p_stack, whh_g], axis=0)                # (PV+2H, 8H)

    # Collapse the three bias-carrying linears (no nonlinearity between them).
    w_final = params["wfc"] @ params["wout"] @ params["wsh"]      # (2H, C)
    b_final = (params["bfc"] @ params["wout"] @ params["wsh"]
               + params["bout"] @ params["wsh"] + params["bsh"])  # (1, C)
    num_classes = w_final.shape[1]
    npad = max(128, _round_up(num_classes, 128))                  # lane-dense out
    w_final = jnp.pad(w_final, ((0, 0), (0, npad - num_classes)))
    b_final = jnp.pad(b_final, ((0, 0), (0, npad - num_classes)))
    wb = jnp.concatenate([w_final, b_final], axis=0)              # (2H+1, Npad)

    return dict(wa=wa, wb=wb, vocab=vocab, num_classes=num_classes)


# ----------------------------------------------------------------------------
# Wrapper: tiny token-id relayout + a single 3-operand pallas_call.
# ----------------------------------------------------------------------------
@functools.partial(jax.jit, static_argnames=("vocab", "num_classes", "use_bf16"))
def omniglot_forward(token_ids, wa, wb, *, vocab, num_classes, use_bf16=True):
    batch, seq_len = token_ids.shape
    batch_p = _round_up(batch, 8)      # sublane-tile aligned per-timestep slices
    npad = wb.shape[1]

    # Time-major, batch-padded id layout; rev ids carry the +V column offset.
    ids_pad = jnp.zeros((batch_p, seq_len), jnp.int32)
    ids_pad = ids_pad.at[:batch].set(token_ids.astype(jnp.int32))
    fwd = ids_pad.T.reshape(seq_len * batch_p)                    # x[b, t]
    rev = (ids_pad[:, ::-1].T + vocab).reshape(seq_len * batch_p)  # x[b, S-1-t]
    ids2 = jnp.stack([fwd, rev], axis=1)                          # (S*Bp, 2)

    vmem = pl.BlockSpec(memory_space=pltpu.MemorySpace.VMEM)
    kernel = functools.partial(_omniglot_kernel, seq_len=seq_len,
                               batch_p=batch_p, use_bf16=use_bf16)

    out = pl.pallas_call(
        kernel,
        out_shape=jax.ShapeDtypeStruct((batch_p, npad), jnp.float32),
        in_specs=[vmem, vmem, vmem],
        out_specs=vmem,
    )(ids2, wa, wb)
    return out[:batch, :num_classes]


# ----------------------------------------------------------------------------
# Deterministic parameter init (natural PyTorch-like layout; hidden_dim=64).
# ----------------------------------------------------------------------------
def init_params(key, *, fc_dim, num_classes, vocab_size, emb_dim, hidden=64):
    keys = jax.random.split(key, 13)
    scale = 0.1

    def rnd(k, shape):
        return scale * jax.random.normal(k, shape, jnp.float32)

    return dict(
        emb=jax.random.normal(keys[0], (vocab_size, emb_dim), jnp.float32),
        # LSTM, forward direction (weights transposed to (in, 4H), gate order
        # [i, f, g, o]; b = b_ih + b_hh folded).
        wih_f=rnd(keys[1], (emb_dim, 4 * hidden)),
        whh_f=rnd(keys[2], (hidden, 4 * hidden)),
        b_f=rnd(keys[3], (1, 4 * hidden)),
        # LSTM, reverse direction.
        wih_r=rnd(keys[4], (emb_dim, 4 * hidden)),
        whh_r=rnd(keys[5], (hidden, 4 * hidden)),
        b_r=rnd(keys[6], (1, 4 * hidden)),
        # SimpleLSTM.fc : Linear(2*hidden, fc_dim)
        wfc=rnd(keys[7], (2 * hidden, fc_dim)),
        bfc=rnd(keys[8], (1, fc_dim)),
        # net_out : Linear(fc_dim, fc_dim // 2)
        wout=rnd(keys[9], (fc_dim, fc_dim // 2)),
        bout=rnd(keys[10], (1, fc_dim // 2)),
        # net_shared : Linear(fc_dim // 2, num_classes)
        wsh=rnd(keys[11], (fc_dim // 2, num_classes)),
        bsh=rnd(keys[12], (1, num_classes)),
    )


# ----------------------------------------------------------------------------
# Pure-JAX reference (natural layout, no Pallas, un-fused) for correctness.
# ----------------------------------------------------------------------------
def reference_forward(token_ids, params):
    hidden = params["whh_f"].shape[0]
    x = jnp.take(params["emb"], token_ids, axis=0).astype(jnp.float32)  # (B,S,E)

    def cell(x_t, h, c, wih, whh, b):
        gates = x_t @ wih + h @ whh + b
        i = jax.nn.sigmoid(gates[:, :hidden])
        f = jax.nn.sigmoid(gates[:, hidden:2 * hidden])
        g = jnp.tanh(gates[:, 2 * hidden:3 * hidden])
        o = jax.nn.sigmoid(gates[:, 3 * hidden:])
        c_new = f * c + i * g
        return o * jnp.tanh(c_new), c_new

    B, S, _ = x.shape
    h = jnp.zeros((B, hidden), jnp.float32)
    c = jnp.zeros((B, hidden), jnp.float32)
    for t in range(S):
        h, c = cell(x[:, t], h, c, params["wih_f"], params["whh_f"], params["b_f"])
    c_fwd = c
    h = jnp.zeros((B, hidden), jnp.float32)
    c = jnp.zeros((B, hidden), jnp.float32)
    for t in reversed(range(S)):
        h, c = cell(x[:, t], h, c, params["wih_r"], params["whh_r"], params["b_r"])
    c_bwd = c

    hidden_cat = jnp.concatenate([c_fwd, c_bwd], axis=1)
    x1 = hidden_cat @ params["wfc"] + params["bfc"]
    x2 = x1 @ params["wout"] + params["bout"]
    return x2 @ params["wsh"] + params["bsh"]


if __name__ == "__main__":
    fc_dim, num_classes = 32, 5
    vocab_size, emb_dim = 20, 8
    batch, seq_len = 2, 8

    key = jax.random.PRNGKey(0)
    pkey, xkey = jax.random.split(key)
    params = init_params(pkey, fc_dim=fc_dim, num_classes=num_classes,
                         vocab_size=vocab_size, emb_dim=emb_dim)
    token_ids = jax.random.randint(xkey, (batch, seq_len), 0, vocab_size,
                                   dtype=jnp.int32)

    fused = fuse_params(params)           # one-time weight prep (cacheable)
    ref = reference_forward(token_ids, params)

    # Exact-semantics check: f32 MXU path must match the un-fused reference.
    out_f32 = jax.block_until_ready(
        omniglot_forward(token_ids, fused["wa"], fused["wb"],
                         vocab=fused["vocab"], num_classes=fused["num_classes"],
                         use_bf16=False))
    assert out_f32.shape == (batch, num_classes)
    assert jnp.allclose(out_f32, ref, atol=1e-4, rtol=1e-4), "f32 mismatch"

    # Default perf path: bf16 MXU inputs (f32 accumulation).  Tolerance
    # reflects ~2^-9 relative operand quantization compounded over 8 steps.
    out = jax.block_until_ready(
        omniglot_forward(token_ids, fused["wa"], fused["wb"],
                         vocab=fused["vocab"], num_classes=fused["num_classes"],
                         use_bf16=True))
    assert out.shape == (batch, num_classes)
    assert jnp.allclose(out, ref, atol=1e-2, rtol=1e-2), "bf16 mismatch"

    print("KERNEL_OK")
</pallas_src>

<mosaic_0001>
module attributes {stable_mosaic.version = 11 : i64} {
  func.func @_omniglot_kernel(%arg0: memref<64x2xi32, #tpu.memory_space<vmem>>, %arg1: memref<168x512xf32, #tpu.memory_space<vmem>>, %arg2: memref<129x128xf32, #tpu.memory_space<vmem>>, %arg3: memref<8x128xf32, #tpu.memory_space<vmem>>) attributes {dimension_semantics = [], scalar_prefetch = 0 : i64, scratch_operands = 0 : i64, tpu.core_type = #tpu.core_type<tc>} {
    %c0 = arith.constant 0 : index
    %c0_0 = arith.constant 0 : index
    %0 = vector.load %arg0[%c0, %c0_0] : memref<64x2xi32, #tpu.memory_space<vmem>>, vector<64x2xi32>
    %1 = tpu.iota {dimensions = array<i32: 1>} : vector<64x40xi32>
    %2 = vector.extract_strided_slice %0 {offsets = [0, 0], sizes = [64, 1], strides = [1, 1]} : vector<64x2xi32> to vector<64x1xi32>
    %3 = vector.broadcast %2 : vector<64x1xi32> to vector<64x40xi32>
    %4 = arith.cmpi eq, %3, %1 : vector<64x40xi32>
    %5 = vector.extract_strided_slice %0 {offsets = [0, 1], sizes = [64, 1], strides = [1, 1]} : vector<64x2xi32> to vector<64x1xi32>
    %6 = vector.broadcast %5 : vector<64x1xi32> to vector<64x40xi32>
    %7 = arith.cmpi eq, %6, %1 : vector<64x40xi32>
    %8 = arith.ori %4, %7 : vector<64x40xi1>
    %9 = arith.extui %8 : vector<64x40xi1> to vector<64x40xi32>
    %10 = arith.sitofp %9 : vector<64x40xi32> to vector<64x40xf32>
    %c0_1 = arith.constant 0 : index
    %c0_2 = arith.constant 0 : index
    %11 = vector.load %arg1[%c0_1, %c0_2] : memref<168x512xf32, #tpu.memory_space<vmem>>, vector<40x512xf32>
    %cst = arith.constant dense<0.000000e+00> : vector<64x512xf32>
    %12 = tpu.matmul %10, %11, %cst {dimension_numbers = #tpu.dot_dimension_numbers<[1], [0], [0], [1], [0, 0, 1, 1], [], []>} : vector<64x40xf32>, vector<40x512xf32>, vector<64x512xf32> -> vector<64x512xf32>
    %c40 = arith.constant 40 : index
    %c0_3 = arith.constant 0 : index
    %13 = vector.load %arg1[%c40, %c0_3] : memref<168x512xf32, #tpu.memory_space<vmem>>, vector<128x512xf32>
    %cst_4 = arith.constant 0.000000e+00 : f32
    %14 = vector.broadcast %cst_4 : f32 to vector<8x128xf32>
    %cst_5 = arith.constant 0.000000e+00 : f32
    %15 = vector.broadcast %cst_5 : f32 to vector<8x128xf32>
    %16 = vector.extract_strided_slice %12 {offsets = [0, 0], sizes = [8, 512], strides = [1, 1]} : vector<64x512xf32> to vector<8x512xf32>
    %cst_6 = arith.constant dense<0.000000e+00> : vector<8x512xf32>
    %17 = tpu.matmul %14, %13, %cst_6 {dimension_numbers = #tpu.dot_dimension_numbers<[1], [0], [0], [1], [0, 0, 1, 1], [], []>} : vector<8x128xf32>, vector<128x512xf32>, vector<8x512xf32> -> vector<8x512xf32>
    %18 = arith.addf %16, %17 : vector<8x512xf32>
    %19 = vector.extract_strided_slice %18 {offsets = [0, 0], sizes = [8, 384], strides = [1, 1]} : vector<8x512xf32> to vector<8x384xf32>
    %cst_7 = arith.constant 5.000000e-01 : f32
    %20 = vector.broadcast %cst_7 : f32 to vector<8x384xf32>
    %21 = arith.mulf %20, %19 : vector<8x384xf32>
    %22 = math.tanh %21 : vector<8x384xf32>
    %cst_8 = arith.constant 5.000000e-01 : f32
    %23 = vector.broadcast %cst_8 : f32 to vector<8x384xf32>
    %24 = arith.mulf %23, %22 : vector<8x384xf32>
    %cst_9 = arith.constant 5.000000e-01 : f32
    %25 = vector.broadcast %cst_9 : f32 to vector<8x384xf32>
    %26 = arith.addf %24, %25 : vector<8x384xf32>
    %27 = vector.extract_strided_slice %18 {offsets = [0, 384], sizes = [8, 128], strides = [1, 1]} : vector<8x512xf32> to vector<8x128xf32>
    %28 = math.tanh %27 : vector<8x128xf32>
    %29 = vector.extract_strided_slice %26 {offsets = [0, 0], sizes = [8, 128], strides = [1, 1]} : vector<8x384xf32> to vector<8x128xf32>
    %30 = vector.extract_strided_slice %26 {offsets = [0, 128], sizes = [8, 128], strides = [1, 1]} : vector<8x384xf32> to vector<8x128xf32>
    %31 = vector.extract_strided_slice %26 {offsets = [0, 256], sizes = [8, 128], strides = [1, 1]} : vector<8x384xf32> to vector<8x128xf32>
    %32 = arith.mulf %30, %15 : vector<8x128xf32>
    %33 = arith.mulf %29, %28 : vector<8x128xf32>
    %34 = arith.addf %32, %33 : vector<8x128xf32>
    %35 = math.tanh %34 : vector<8x128xf32>
    %36 = arith.mulf %31, %35 : vector<8x128xf32>
    %37 = vector.extract_strided_slice %12 {offsets = [8, 0], sizes = [8, 512], strides = [1, 1]} : vector<64x512xf32> to vector<8x512xf32>
    %cst_10 = arith.constant dense<0.000000e+00> : vector<8x512xf32>
    %38 = tpu.matmul %36, %13, %cst_10 {dimension_numbers = #tpu.dot_dimension_numbers<[1], [0], [0], [1], [0, 0, 1, 1], [], []>} : vector<8x128xf32>, vector<128x512xf32>, vector<8x512xf32> -> vector<8x512xf32>
    %39 = arith.addf %37, %38 : vector<8x512xf32>
    %40 = vector.extract_strided_slice %39 {offsets = [0, 0], sizes = [8, 384], strides = [1, 1]} : vector<8x512xf32> to vector<8x384xf32>
    %cst_11 = arith.constant 5.000000e-01 : f32
    %41 = vector.broadcast %cst_11 : f32 to vector<8x384xf32>
    %42 = arith.mulf %41, %40 : vector<8x384xf32>
    %43 = math.tanh %42 : vector<8x384xf32>
    %cst_12 = arith.constant 5.000000e-01 : f32
    %44 = vector.broadcast %cst_12 : f32 to vector<8x384xf32>
    %45 = arith.mulf %44, %43 : vector<8x384xf32>
    %cst_13 = arith.constant 5.000000e-01 : f32
    %46 = vector.broadcast %cst_13 : f32 to vector<8x384xf32>
    %47 = arith.addf %45, %46 : vector<8x384xf32>
    %48 = vector.extract_strided_slice %39 {offsets = [0, 384], sizes = [8, 128], strides = [1, 1]} : vector<8x512xf32> to vector<8x128xf32>
    %49 = math.tanh %48 : vector<8x128xf32>
    %50 = vector.extract_strided_slice %47 {offsets = [0, 0], sizes = [8, 128], strides = [1, 1]} : vector<8x384xf32> to vector<8x128xf32>
    %51 = vector.extract_strided_slice %47 {offsets = [0, 128], sizes = [8, 128], strides = [1, 1]} : vector<8x384xf32> to vector<8x128xf32>
    %52 = vector.extract_strided_slice %47 {offsets = [0, 256], sizes = [8, 128], strides = [1, 1]} : vector<8x384xf32> to vector<8x128xf32>
    %53 = arith.mulf %51, %34 : vector<8x128xf32>
    %54 = arith.mulf %50, %49 : vector<8x128xf32>
    %55 = arith.addf %53, %54 : vector<8x128xf32>
    %56 = math.tanh %55 : vector<8x128xf32>
    %57 = arith.mulf %52, %56 : vector<8x128xf32>
    %58 = vector.extract_strided_slice %12 {offsets = [16, 0], sizes = [8, 512], strides = [1, 1]} : vector<64x512xf32> to vector<8x512xf32>
    %cst_14 = arith.constant dense<0.000000e+00> : vector<8x512xf32>
    %59 = tpu.matmul %57, %13, %cst_14 {dimension_numbers = #tpu.dot_dimension_numbers<[1], [0], [0], [1], [0, 0, 1, 1], [], []>} : vector<8x128xf32>, vector<128x512xf32>, vector<8x512xf32> -> vector<8x512xf32>
    %60 = arith.addf %58, %59 : vector<8x512xf32>
    %61 = vector.extract_strided_slice %60 {offsets = [0, 0], sizes = [8, 384], strides = [1, 1]} : vector<8x512xf32> to vector<8x384xf32>
    %cst_15 = arith.constant 5.000000e-01 : f32
    %62 = vector.broadcast %cst_15 : f32 to vector<8x384xf32>
    %63 = arith.mulf %62, %61 : vector<8x384xf32>
    %64 = math.tanh %63 : vector<8x384xf32>
    %cst_16 = arith.constant 5.000000e-01 : f32
    %65 = vector.broadcast %cst_16 : f32 to vector<8x384xf32>
    %66 = arith.mulf %65, %64 : vector<8x384xf32>
    %cst_17 = arith.constant 5.000000e-01 : f32
    %67 = vector.broadcast %cst_17 : f32 to vector<8x384xf32>
    %68 = arith.addf %66, %67 : vector<8x384xf32>
    %69 = vector.extract_strided_slice %60 {offsets = [0, 384], sizes = [8, 128], strides = [1, 1]} : vector<8x512xf32> to vector<8x128xf32>
    %70 = math.tanh %69 : vector<8x128xf32>
    %71 = vector.extract_strided_slice %68 {offsets = [0, 0], sizes = [8, 128], strides = [1, 1]} : vector<8x384xf32> to vector<8x128xf32>
    %72 = vector.extract_strided_slice %68 {offsets = [0, 128], sizes = [8, 128], strides = [1, 1]} : vector<8x384xf32> to vector<8x128xf32>
    %73 = vector.extract_strided_slice %68 {offsets = [0, 256], sizes = [8, 128], strides = [1, 1]} : vector<8x384xf32> to vector<8x128xf32>
    %74 = arith.mulf %72, %55 : vector<8x128xf32>
    %75 = arith.mulf %71, %70 : vector<8x128xf32>
    %76 = arith.addf %74, %75 : vector<8x128xf32>
    %77 = math.tanh %76 : vector<8x128xf32>
    %78 = arith.mulf %73, %77 : vector<8x128xf32>
    %79 = vector.extract_strided_slice %12 {offsets = [24, 0], sizes = [8, 512], strides = [1, 1]} : vector<64x512xf32> to vector<8x512xf32>
    %cst_18 = arith.constant dense<0.000000e+00> : vector<8x512xf32>
    %80 = tpu.matmul %78, %13, %cst_18 {dimension_numbers = #tpu.dot_dimension_numbers<[1], [0], [0], [1], [0, 0, 1, 1], [], []>} : vector<8x128xf32>, vector<128x512xf32>, vector<8x512xf32> -> vector<8x512xf32>
    %81 = arith.addf %79, %80 : vector<8x512xf32>
    %82 = vector.extract_strided_slice %81 {offsets = [0, 0], sizes = [8, 384], strides = [1, 1]} : vector<8x512xf32> to vector<8x384xf32>
    %cst_19 = arith.constant 5.000000e-01 : f32
    %83 = vector.broadcast %cst_19 : f32 to vector<8x384xf32>
    %84 = arith.mulf %83, %82 : vector<8x384xf32>
    %85 = math.tanh %84 : vector<8x384xf32>
    %cst_20 = arith.constant 5.000000e-01 : f32
    %86 = vector.broadcast %cst_20 : f32 to vector<8x384xf32>
    %87 = arith.mulf %86, %85 : vector<8x384xf32>
    %cst_21 = arith.constant 5.000000e-01 : f32
    %88 = vector.broadcast %cst_21 : f32 to vector<8x384xf32>
    %89 = arith.addf %87, %88 : vector<8x384xf32>
    %90 = vector.extract_strided_slice %81 {offsets = [0, 384], sizes = [8, 128], strides = [1, 1]} : vector<8x512xf32> to vector<8x128xf32>
    %91 = math.tanh %90 : vector<8x128xf32>
    %92 = vector.extract_strided_slice %89 {offsets = [0, 0], sizes = [8, 128], strides = [1, 1]} : vector<8x384xf32> to vector<8x128xf32>
    %93 = vector.extract_strided_slice %89 {offsets = [0, 128], sizes = [8, 128], strides = [1, 1]} : vector<8x384xf32> to vector<8x128xf32>
    %94 = vector.extract_strided_slice %89 {offsets = [0, 256], sizes = [8, 128], strides = [1, 1]} : vector<8x384xf32> to vector<8x128xf32>
    %95 = arith.mulf %93, %76 : vector<8x128xf32>
    %96 = arith.mulf %92, %91 : vector<8x128xf32>
    %97 = arith.addf %95, %96 : vector<8x128xf32>
    %98 = math.tanh %97 : vector<8x128xf32>
    %99 = arith.mulf %94, %98 : vector<8x128xf32>
    %100 = vector.extract_strided_slice %12 {offsets = [32, 0], sizes = [8, 512], strides = [1, 1]} : vector<64x512xf32> to vector<8x512xf32>
    %cst_22 = arith.constant dense<0.000000e+00> : vector<8x512xf32>
    %101 = tpu.matmul %99, %13, %cst_22 {dimension_numbers = #tpu.dot_dimension_numbers<[1], [0], [0], [1], [0, 0, 1, 1], [], []>} : vector<8x128xf32>, vector<128x512xf32>, vector<8x512xf32> -> vector<8x512xf32>
    %102 = arith.addf %100, %101 : vector<8x512xf32>
    %103 = vector.extract_strided_slice %102 {offsets = [0, 0], sizes = [8, 384], strides = [1, 1]} : vector<8x512xf32> to vector<8x384xf32>
    %cst_23 = arith.constant 5.000000e-01 : f32
    %104 = vector.broadcast %cst_23 : f32 to vector<8x384xf32>
    %105 = arith.mulf %104, %103 : vector<8x384xf32>
    %106 = math.tanh %105 : vector<8x384xf32>
    %cst_24 = arith.constant 5.000000e-01 : f32
    %107 = vector.broadcast %cst_24 : f32 to vector<8x384xf32>
    %108 = arith.mulf %107, %106 : vector<8x384xf32>
    %cst_25 = arith.constant 5.000000e-01 : f32
    %109 = vector.broadcast %cst_25 : f32 to vector<8x384xf32>
    %110 = arith.addf %108, %109 : vector<8x384xf32>
    %111 = vector.extract_strided_slice %102 {offsets = [0, 384], sizes = [8, 128], strides = [1, 1]} : vector<8x512xf32> to vector<8x128xf32>
    %112 = math.tanh %111 : vector<8x128xf32>
    %113 = vector.extract_strided_slice %110 {offsets = [0, 0], sizes = [8, 128], strides = [1, 1]} : vector<8x384xf32> to vector<8x128xf32>
    %114 = vector.extract_strided_slice %110 {offsets = [0, 128], sizes = [8, 128], strides = [1, 1]} : vector<8x384xf32> to vector<8x128xf32>
    %115 = vector.extract_strided_slice %110 {offsets = [0, 256], sizes = [8, 128], strides = [1, 1]} : vector<8x384xf32> to vector<8x128xf32>
    %116 = arith.mulf %114, %97 : vector<8x128xf32>
    %117 = arith.mulf %113, %112 : vector<8x128xf32>
    %118 = arith.addf %116, %117 : vector<8x128xf32>
    %119 = math.tanh %118 : vector<8x128xf32>
    %120 = arith.mulf %115, %119 : vector<8x128xf32>
    %121 = vector.extract_strided_slice %12 {offsets = [40, 0], sizes = [8, 512], strides = [1, 1]} : vector<64x512xf32> to vector<8x512xf32>
    %cst_26 = arith.constant dense<0.000000e+00> : vector<8x512xf32>
    %122 = tpu.matmul %120, %13, %cst_26 {dimension_numbers = #tpu.dot_dimension_numbers<[1], [0], [0], [1], [0, 0, 1, 1], [], []>} : vector<8x128xf32>, vector<128x512xf32>, vector<8x512xf32> -> vector<8x512xf32>
    %123 = arith.addf %121, %122 : vector<8x512xf32>
    %124 = vector.extract_strided_slice %123 {offsets = [0, 0], sizes = [8, 384], strides = [1, 1]} : vector<8x512xf32> to vector<8x384xf32>
    %cst_27 = arith.constant 5.000000e-01 : f32
    %125 = vector.broadcast %cst_27 : f32 to vector<8x384xf32>
    %126 = arith.mulf %125, %124 : vector<8x384xf32>
    %127 = math.tanh %126 : vector<8x384xf32>
    %cst_28 = arith.constant 5.000000e-01 : f32
    %128 = vector.broadcast %cst_28 : f32 to vector<8x384xf32>
    %129 = arith.mulf %128, %127 : vector<8x384xf32>
    %cst_29 = arith.constant 5.000000e-01 : f32
    %130 = vector.broadcast %cst_29 : f32 to vector<8x384xf32>
    %131 = arith.addf %129, %130 : vector<8x384xf32>
    %132 = vector.extract_strided_slice %123 {offsets = [0, 384], sizes = [8, 128], strides = [1, 1]} : vector<8x512xf32> to vector<8x128xf32>
    %133 = math.tanh %132 : vector<8x128xf32>
    %134 = vector.extract_strided_slice %131 {offsets = [0, 0], sizes = [8, 128], strides = [1, 1]} : vector<8x384xf32> to vector<8x128xf32>
    %135 = vector.extract_strided_slice %131 {offsets = [0, 128], sizes = [8, 128], strides = [1, 1]} : vector<8x384xf32> to vector<8x128xf32>
    %136 = vector.extract_strided_slice %131 {offsets = [0, 256], sizes = [8, 128], strides = [1, 1]} : vector<8x384xf32> to vector<8x128xf32>
    %137 = arith.mulf %135, %118 : vector<8x128xf32>
    %138 = arith.mulf %134, %133 : vector<8x128xf32>
    %139 = arith.addf %137, %138 : vector<8x128xf32>
    %140 = math.tanh %139 : vector<8x128xf32>
    %141 = arith.mulf %136, %140 : vector<8x128xf32>
    %142 = vector.extract_strided_slice %12 {offsets = [48, 0], sizes = [8, 512], strides = [1, 1]} : vector<64x512xf32> to vector<8x512xf32>
    %cst_30 = arith.constant dense<0.000000e+00> : vector<8x512xf32>
    %143 = tpu.matmul %141, %13, %cst_30 {dimension_numbers = #tpu.dot_dimension_numbers<[1], [0], [0], [1], [0, 0, 1, 1], [], []>} : vector<8x128xf32>, vector<128x512xf32>, vector<8x512xf32> -> vector<8x512xf32>
    %144 = arith.addf %142, %143 : vector<8x512xf32>
    %145 = vector.extract_strided_slice %144 {offsets = [0, 0], sizes = [8, 384], strides = [1, 1]} : vector<8x512xf32> to vector<8x384xf32>
    %cst_31 = arith.constant 5.000000e-01 : f32
    %146 = vector.broadcast %cst_31 : f32 to vector<8x384xf32>
    %147 = arith.mulf %146, %145 : vector<8x384xf32>
    %148 = math.tanh %147 : vector<8x384xf32>
    %cst_32 = arith.constant 5.000000e-01 : f32
    %149 = vector.broadcast %cst_32 : f32 to vector<8x384xf32>
    %150 = arith.mulf %149, %148 : vector<8x384xf32>
    %cst_33 = arith.constant 5.000000e-01 : f32
    %151 = vector.broadcast %cst_33 : f32 to vector<8x384xf32>
    %152 = arith.addf %150, %151 : vector<8x384xf32>
    %153 = vector.extract_strided_slice %144 {offsets = [0, 384], sizes = [8, 128], strides = [1, 1]} : vector<8x512xf32> to vector<8x128xf32>
    %154 = math.tanh %153 : vector<8x128xf32>
    %155 = vector.extract_strided_slice %152 {offsets = [0, 0], sizes = [8, 128], strides = [1, 1]} : vector<8x384xf32> to vector<8x128xf32>
    %156 = vector.extract_strided_slice %152 {offsets = [0, 128], sizes = [8, 128], strides = [1, 1]} : vector<8x384xf32> to vector<8x128xf32>
    %157 = vector.extract_strided_slice %152 {offsets = [0, 256], sizes = [8, 128], strides = [1, 1]} : vector<8x384xf32> to vector<8x128xf32>
    %158 = arith.mulf %156, %139 : vector<8x128xf32>
    %159 = arith.mulf %155, %154 : vector<8x128xf32>
    %160 = arith.addf %158, %159 : vector<8x128xf32>
    %161 = math.tanh %160 : vector<8x128xf32>
    %162 = arith.mulf %157, %161 : vector<8x128xf32>
    %163 = vector.extract_strided_slice %12 {offsets = [56, 0], sizes = [8, 512], strides = [1, 1]} : vector<64x512xf32> to vector<8x512xf32>
    %cst_34 = arith.constant dense<0.000000e+00> : vector<8x512xf32>
    %164 = tpu.matmul %162, %13, %cst_34 {dimension_numbers = #tpu.dot_dimension_numbers<[1], [0], [0], [1], [0, 0, 1, 1], [], []>} : vector<8x128xf32>, vector<128x512xf32>, vector<8x512xf32> -> vector<8x512xf32>
    %165 = arith.addf %163, %164 : vector<8x512xf32>
    %166 = vector.extract_strided_slice %165 {offsets = [0, 0], sizes = [8, 384], strides = [1, 1]} : vector<8x512xf32> to vector<8x384xf32>
    %cst_35 = arith.constant 5.000000e-01 : f32
    %167 = vector.broadcast %cst_35 : f32 to vector<8x384xf32>
    %168 = arith.mulf %167, %166 : vector<8x384xf32>
    %169 = math.tanh %168 : vector<8x384xf32>
    %cst_36 = arith.constant 5.000000e-01 : f32
    %170 = vector.broadcast %cst_36 : f32 to vector<8x384xf32>
    %171 = arith.mulf %170, %169 : vector<8x384xf32>
    %cst_37 = arith.constant 5.000000e-01 : f32
    %172 = vector.broadcast %cst_37 : f32 to vector<8x384xf32>
    %173 = arith.addf %171, %172 : vector<8x384xf32>
    %174 = vector.extract_strided_slice %165 {offsets = [0, 384], sizes = [8, 128], strides = [1, 1]} : vector<8x512xf32> to vector<8x128xf32>
    %175 = math.tanh %174 : vector<8x128xf32>
    %176 = vector.extract_strided_slice %173 {offsets = [0, 0], sizes = [8, 128], strides = [1, 1]} : vector<8x384xf32> to vector<8x128xf32>
    %177 = vector.extract_strided_slice %173 {offsets = [0, 128], sizes = [8, 128], strides = [1, 1]} : vector<8x384xf32> to vector<8x128xf32>
    %178 = arith.mulf %177, %160 : vector<8x128xf32>
    %179 = arith.mulf %176, %175 : vector<8x128xf32>
    %180 = arith.addf %178, %179 : vector<8x128xf32>
    %c0_38 = arith.constant 0 : index
    %c0_39 = arith.constant 0 : index
    %181 = vector.load %arg2[%c0_38, %c0_39] : memref<129x128xf32, #tpu.memory_space<vmem>>, vector<128x128xf32>
    %c128 = arith.constant 128 : index
    %c0_40 = arith.constant 0 : index
    %182 = vector.load %arg2[%c128, %c0_40] : memref<129x128xf32, #tpu.memory_space<vmem>>, vector<1x128xf32>
    %cst_41 = arith.constant dense<0.000000e+00> : vector<8x128xf32>
    %183 = tpu.matmul %180, %181, %cst_41 {dimension_numbers = #tpu.dot_dimension_numbers<[1], [0], [0], [1], [0, 0, 1, 1], [], []>} : vector<8x128xf32>, vector<128x128xf32>, vector<8x128xf32> -> vector<8x128xf32>
    %184 = vector.broadcast %182 : vector<1x128xf32> to vector<8x128xf32>
    %185 = arith.addf %183, %184 : vector<8x128xf32>
    %c0_42 = arith.constant 0 : index
    %c0_43 = arith.constant 0 : index
    %186 = vector.load %arg3[%c0_42, %c0_43] : memref<8x128xf32, #tpu.memory_space<vmem>>, vector<8x128xf32>
    tpu.vector_store %arg3[%c0_42, %c0_43], %185 {strides = array<i32>} : memref<8x128xf32, #tpu.memory_space<vmem>>, vector<8x128xf32>,
    return
  }
}

</mosaic_0001>

<bundles_post_ra>
// kernel: omniglot_forward.1
= control target key start
LH: loop header
LB: loop body
LE: loop exit
PB: predicated region body
PF: predicated region fallthrough
CT: control target
= control target key end

     0   :  { %8 = vsyncpa [#allocation3], 0  ;;  %s2635_s12 = smov [#allocation2]   ;;  %s3222_s0 = inlined_call_operand.vmem [shape: s32[64,2], index: 0, kind: input, shape index: {}]   ;;  %s3223_s1 = inlined_call_operand.hbm [shape: f32[168,512], index: 1, kind: input, shape index: {}]   ;;  %s3224_s2 = inlined_call_operand.vmem [shape: f32[129,128], index: 2, kind: input, shape index: {}]   ;;  %s3225_s3 = inlined_call_operand.vmem [shape: f32[8,128], index: 3, kind: output, shape index: {}]  }
   0x1   :  { %s16_s13 = sshll.u32 %s2635_s12, 4  ;;  %s2611_s16 = scalar_lea.hbm %s3223_s1, 10752  ;;  %s17_s13 = int_to_ptr.vmem [resolvable:$true] %s16_s13 }
   0x2   :  { %p2612_p0 = scmp.ne.s32.totalorder %s3223_s1, %s2611_s16  ;;  %p2615_p1 = scmp.lt.u32.totalorder %s2611_s16, %s3223_s1 }
   0x4   :  { %p2617_p2 = pnand %p2615_p1, %p2612_p0 }
   0x6   :  { %2620 = shalt.err (!%p2617_p2)
}
   0x7   :  { %s2621_s21 = scalar_lea.vmem %s17_s13, 10752  ;;  %p2626_p4 = scmp.lt.s32.totalorder %s17_s13, %s17_s13 }
   0x8   :  { %p2622_p3 = scmp.ne.s32.totalorder %s17_s13, %s2621_s21  ;;  %p2627_p5 = scmp.lt.s32.totalorder %s2621_s21, %s2621_s21 }
   0xa   :  { %p2628_p6 = por %p2627_p5, %p2626_p4 }
   0xc   :  { %p2629_p7 = pnand %p2628_p6, %p2622_p3 }
   0xe   :  { %2632 = shalt.err (!%p2629_p7)
}
   0xf   :  { %s2636_s22 = smov 512   ;;  %s2637_s23 = smov 32  }
  0x10   :  { %22 = dma.hbm_to_vmem [thread:$0]  %s3223_s1, 10752, %s17_s13, [#allocation3], %s2636_s22, %s2636_s22, %s2637_s23  }
  0x11   :  { %2633 = dma.done.wait [#allocation3], 10752  }
  0x12   :  { %2634 = vsyncadd [#allocation3], 4294956544  ;;  %v2638_v0 = vmov 0   ;;  %v29_v1 = vld [vmem:[%s3222_s0 + $0x8] sm:$0xff]  ;;  %v28_v2 = vld [vmem:[%s3222_s0] sm:$0xff]  ;;  %v2639_v4 = vmov 0.0   ;;  %v36_v45 = vlaneseq }
  0x13   :  { %2532 = vset.pattern.permute.xlu1 %v2638_v0  ;;  %2530 = vset.pattern.permute.xlu0 %v2638_v0  ;;  %v127_v3 = vld [vmem:[#allocation2 + $0x8] sm:$0xff]  ;;  %v126_v6 = vld [vmem:[#allocation2] sm:$0xff]  ;;  %v129_v10 = vld [vmem:[#allocation2 + $0x18] sm:$0xff]  ;;  %v2640_v13 = vmov 1   ;;  %vm146_vm1 = vcmask 326656  }
  0x14   :  { %42 = vperm.xlu1 %2532, %v29_v1   ;;  %39 = vperm.xlu0 %2530, %v28_v2   ;;  %v131_v5 = vld [vmem:[#allocation2 + $0x28] sm:$0xff]  ;;  %v130_v7 = vld [vmem:[#allocation2 + $0x20] sm:$0xff]  ;;  %v133_v11 = vld [vmem:[#allocation2 + $0x38] sm:$0xff]  ;;  %v2707_v48 = vand.u32 127, %v36_v45 }
  0x15   :  { %235 = vmatprep.mubr.f32.mxu0 %v2639_v4  ;;  %348 = vmatprep.mubr.f32.mxu1 %v2639_v4  ;;  %v1938_v8 = vpack.c.bf16 %v131_v5, %v127_v3  ;;  %v1940_v9 = vpack.c.bf16 %v130_v7, %v126_v6  ;;  %v128_v12 = vld [vmem:[#allocation2 + $0x10] sm:$0xff]  ;;  %v30_v14 = vld [vmem:[%s3222_s0 + $0x10] sm:$0xff]  ;;  %v1946_v15 = vpack.c.bf16 %v133_v11, %v129_v10  ;;  %v134_v21 = vld [vmem:[#allocation2 + $0x40] sm:$0xff] }
  0x16   :  { %v132_v16 = vld [vmem:[#allocation2 + $0x30] sm:$0xff]  ;;  %v135_v17 = vld [vmem:[#allocation2 + $0x48] sm:$0xff]  ;;  %v138_v22 = vld [vmem:[#allocation2 + $0x60] sm:$0xff] }
  0x17   :  { %v139_v18 = vld [vmem:[#allocation2 + $0x68] sm:$0xff]  ;;  %v1948_v19 = vpack.c.bf16 %v132_v16, %v128_v12  ;;  %v137_v23 = vld [vmem:[#allocation2 + $0x58] sm:$0xff]  ;;  %1939 = vmatprep.subr.bf16.mxu0 %v1938_v8  ;;  %1947 = vmatprep.subr.bf16.mxu1 %v1946_v15  ;;  %v136_v25 = vld [vmem:[#allocation2 + $0x50] sm:$0xff]  ;;  %v1944_v27 = vpack.c.bf16 %v138_v22, %v134_v21 }
  0x18   :  { %2533 = vset.pattern.permute.xlu1 %v2640_v13  ;;  %2531 = vset.pattern.permute.xlu0 %v2640_v13  ;;  %v1942_v20 = vpack.c.bf16 %v139_v18, %v135_v17  ;;  %v141_v24 = vld [vmem:[#allocation2 + $0x78] sm:$0xff]  ;;  %v140_v26 = vld [vmem:[#allocation2 + $0x70] sm:$0xff]  ;;  %v143_v30 = vld [vmem:[#allocation2 + $0x88] sm:$0xff] }
  0x19   :  { %74 = vperm.xlu1 %2533, %v29_v1   ;;  %71 = vperm.xlu0 %2531, %v28_v2   ;;  %v1950_v28 = vpack.c.bf16 %v141_v24, %v137_v23  ;;  %v1952_v29 = vpack.c.bf16 %v140_v26, %v136_v25  ;;  %v145_v31 = vld [vmem:[#allocation2 + $0x98] sm:$0xff]  ;;  %v397_v32 = vld [vmem:[#allocation2 + $0xa8] sm:$0xff]  ;;  %v31_v35 = vld [vmem:[%s3222_s0 + $0x18] sm:$0xff] }
  0x1a   :  { %1941 = vmatpush1.bf16.msra.mxu0 %v1940_v9  ;;  %1949 = vmatpush1.bf16.msra.mxu1 %v1948_v19  ;;  %v401_v33 = vld [vmem:[#allocation2 + $0xc8] sm:$0xff]  ;;  %v399_v34 = vld [vmem:[#allocation2 + $0xb8] sm:$0xff]  ;;  %v142_v37 = vld [vmem:[#allocation2 + $0x80] sm:$0xff] }
  0x1b   :  { %1943 = vmatprep.subr.bf16.mxu0 %v1942_v20  ;;  %1951 = vmatprep.subr.bf16.mxu1 %v1950_v28  ;;  %v403_v36 = vld [vmem:[#allocation2 + $0xd8] sm:$0xff]  ;;  %v144_v38 = vld [vmem:[#allocation2 + $0x90] sm:$0xff]  ;;  %v2689_v39 = vpack.c.bf16 %v401_v33, %v397_v32  ;;  %v33_v42 = vld [vmem:[%s3222_s0 + $0x28] sm:$0xff] }
  0x1c   :  { %v2691_v40 = vpack.c.bf16 %v403_v36, %v399_v34  ;;  %v32_v41 = vld [vmem:[%s3222_s0 + $0x20] sm:$0xff]  ;;  %v34_v43 = vld [vmem:[%s3222_s0 + $0x30] sm:$0xff]  ;;  %v35_v44 = vld [vmem:[%s3222_s0 + $0x38] sm:$0xff] }
  0x1d   :  { %2534 = vset.pattern.permute.xlu1 %v2638_v0  ;;  %77 = vperm.xlu0 %2531, %v30_v14   ;;  %v396_v49 = vld [vmem:[#allocation2 + $0xa0] sm:$0xff]  ;;  %v398_v51 = vld [vmem:[#allocation2 + $0xb0] sm:$0xff]  ;;  %v405_v55 = vld [vmem:[#allocation2 + $0xe8] sm:$0xff] }
  0x1e   :  { %45 = vperm.xlu1 %2534, %v30_v14   ;;  %1945 = vmatpush1.bf16.msra.mxu0 %v1944_v27  ;;  %v400_v50 = vld [vmem:[#allocation2 + $0xc0] sm:$0xff]  ;;  %v402_v52 = vld [vmem:[#allocation2 + $0xd0] sm:$0xff]  ;;  %v409_v56 = vld [vmem:[#allocation2 + $0x108] sm:$0xff] }
  0x1f   :  { %1953 = vmatpush1.bf16.msra.mxu1 %v1952_v29  ;;  %179 = vmatprep.subr.mxu0 %v143_v30  ;;  %v407_v57 = vld [vmem:[#allocation2 + $0xf8] sm:$0xff]  ;;  %v2712_v59 = vpack.c.bf16 %v400_v50, %v396_v49  ;;  %v2714_v60 = vpack.c.bf16 %v402_v52, %v398_v51  ;;  %v404_v61 = vld [vmem:[#allocation2 + $0xe0] sm:$0xff]  ;;  %v406_v63 = vld [vmem:[#allocation2 + $0xf0] sm:$0xff]  ;;  %v2718_v3 = vpack.c.bf16 %v409_v56, %v405_v55 }
  0x20   :  { %292 = vmatprep.subr.mxu1 %v145_v31  ;;  %v411_v58 = vld [vmem:[#allocation2 + $0x118] sm:$0xff]  ;;  %v408_v62 = vld [vmem:[#allocation2 + $0x100] sm:$0xff]  ;;  %v410_v0 = vld [vmem:[#allocation2 + $0x110] sm:$0xff] }
  0x21   :  { %80 = vperm.xlu0 %2531, %v31_v35   ;;  %v2720_v5 = vpack.c.bf16 %v411_v58, %v407_v57  ;;  %v413_v6 = vld [vmem:[#allocation2 + $0x128] sm:$0xff]  ;;  %v2730_v10 = vpack.c.bf16 %v408_v62, %v404_v61  ;;  %v415_v11 = vld [vmem:[#allocation2 + $0x138] sm:$0xff]  ;;  %v2736_v13 = vpack.c.bf16 %v410_v0, %v406_v63  ;;  %v412_v14 = vld [vmem:[#allocation2 + $0x120] sm:$0xff] }
  0x22   :  { %48 = vperm.xlu1 %2534, %v31_v35   ;;  %180 = vmatpush1.msra.mxu0 %v142_v37  ;;  %v417_v7 = vld [vmem:[#allocation2 + $0x148] sm:$0xff]  ;;  %v419_v12 = vld [vmem:[#allocation2 + $0x158] sm:$0xff]  ;;  %v416_v15 = vld [vmem:[#allocation2 + $0x140] sm:$0xff] }
  0x23   :  { %293 = vmatpush1.msra.mxu1 %v144_v38  ;;  %1955 = vmatprep.subr.bf16.mxu0 %v2689_v39  ;;  %v414_v16 = vld [vmem:[#allocation2 + $0x130] sm:$0xff]  ;;  %v2745_v20 = vpack.c.bf16 %v417_v7, %v413_v6  ;;  %v2747_v21 = vpack.c.bf16 %v419_v12, %v415_v11  ;;  %v421_v22 = vld [vmem:[#allocation2 + $0x168] sm:$0xff]  ;;  %v2759_v26 = vpack.c.bf16 %v416_v15, %v412_v14  ;;  %v423_v27 = vld [vmem:[#allocation2 + $0x178] sm:$0xff] }
  0x24   :  { %1987 = vmatprep.subr.bf16.mxu1 %v2691_v40  ;;  %v418_v17 = vld [vmem:[#allocation2 + $0x150] sm:$0xff]  ;;  %v425_v23 = vld [vmem:[#allocation2 + $0x188] sm:$0xff]  ;;  %v427_v28 = vld [vmem:[#allocation2 + $0x198] sm:$0xff] }
  0x25   :  { %83 = vperm.xlu0 %2531, %v32_v41   ;;  %v2765_v29 = vpack.c.bf16 %v418_v17, %v414_v16  ;;  %v420_v30 = vld [vmem:[#allocation2 + $0x160] sm:$0xff]  ;;  %v422_v32 = vld [vmem:[#allocation2 + $0x170] sm:$0xff]  ;;  %v2774_v36 = vpack.c.bf16 %v425_v23, %v421_v22  ;;  %v2776_v37 = vpack.c.bf16 %v427_v28, %v423_v27  ;;  %v429_v38 = vld [vmem:[#allocation2 + $0x1a8] sm:$0xff] }
  0x26   :  { %51 = vperm.xlu1 %2534, %v32_v41   ;;  %v424_v31 = vld [vmem:[#allocation2 + $0x180] sm:$0xff]  ;;  %v426_v33 = vld [vmem:[#allocation2 + $0x190] sm:$0xff]  ;;  %v433_v41 = vld [vmem:[#allocation2 + $0x1c8] sm:$0xff] }
  0x27   :  { %v431_v45 = vld [vmem:[#allocation2 + $0x1b8] sm:$0xff]  ;;  %v428_v49 = vld [vmem:[#allocation2 + $0x1a0] sm:$0xff]  ;;  %v430_v51 = vld [vmem:[#allocation2 + $0x1b0] sm:$0xff]  ;;  %v2803_v55 = vpack.c.bf16 %v433_v41, %v429_v38 }
  0x28   :  { %v432_v50 = vld [vmem:[#allocation2 + $0x1c0] sm:$0xff]  ;;  %v434_v52 = vld [vmem:[#allocation2 + $0x1d0] sm:$0xff]  ;;  %v437_v57 = vld [vmem:[#allocation2 + $0x1e8] sm:$0xff] }
  0x29   :  { %86 = vperm.xlu0 %2531, %v33_v42   ;;  %v441_v58 = vld [vmem:[#allocation2 + $0x208] sm:$0xff]  ;;  %v2817_v63 = vpack.c.bf16 %v432_v50, %v428_v49  ;;  %v439_v0 = vld [vmem:[#allocation2 + $0x1f8] sm:$0xff]  ;;  %v436_v6 = vld [vmem:[#allocation2 + $0x1e0] sm:$0xff] }
  0x2a   :  { %54 = vperm.xlu1 %2534, %v33_v42   ;;  %v440_v7 = vld [vmem:[#allocation2 + $0x200] sm:$0xff]  ;;  %v438_v8 = vld [vmem:[#allocation2 + $0x1f0] sm:$0xff]  ;;  %v2832_v14 = vpack.c.bf16 %v441_v58, %v437_v57  ;;  %v445_v16 = vld [vmem:[#allocation2 + $0x228] sm:$0xff] }
  0x2b   :  { %v449_v17 = vld [vmem:[#allocation2 + $0x248] sm:$0xff]  ;;  %v2846_v22 = vpack.c.bf16 %v440_v7, %v436_v6  ;;  %v447_v23 = vld [vmem:[#allocation2 + $0x238] sm:$0xff]  ;;  %v444_v27 = vld [vmem:[#allocation2 + $0x220] sm:$0xff] }
  0x2c   :  { %v451_v24 = vld [vmem:[#allocation2 + $0x258] sm:$0xff]  ;;  %v448_v28 = vld [vmem:[#allocation2 + $0x240] sm:$0xff]  ;;  %v453_v38 = vld [vmem:[#allocation2 + $0x268] sm:$0xff] }
  0x2d   :  { %89 = vperm.xlu0 %2531, %v34_v43   ;;  %v457_v41 = vld [vmem:[#allocation2 + $0x288] sm:$0xff]  ;;  %v459_v49 = vld [vmem:[#allocation2 + $0x298] sm:$0xff] }
  0x2e   :  { %57 = vperm.xlu1 %2534, %v34_v43   ;;  %v2890_v58 = vpack.c.bf16 %v457_v41, %v453_v38 }
  0x31   :  { %92 = vperm.xlu0 %2531, %v35_v44  }
  0x32   :  { %60 = vperm.xlu1 %2534, %v35_v44   ;;  %v2788_v44 = vpack.c.bf16 %v424_v31, %v420_v30  ;;  %v446_v30 = vld [vmem:[#allocation2 + $0x230] sm:$0xff] }
  0x33   :  { %v450_v31 = vld [vmem:[#allocation2 + $0x250] sm:$0xff] }
  0x34   :  { %v2881_v50 = vpack.c.bf16 %v450_v31, %v446_v30 }
  0x93   :  { %v40_v46 = vpop.permute.xlu0 %39  ;;  %v43_v47 = vpop.permute.xlu1 %42 }
  0x94   :  { %vm62_vm2 = vcmp.eq.s32.totalorder %v40_v46, %v2707_v48  ;;  %vm63_vm5 = vcmp.eq.s32.totalorder %v43_v47, %v2707_v48  ;;  %v435_v46 = vld [vmem:[#allocation2 + $0x1d8] sm:$0xff]  ;;  %v2794_v47 = vpack.c.bf16 %v426_v33, %v422_v32 }
  0x95   :  { %v2805_v56 = vpack.c.bf16 %v435_v46, %v431_v45  ;;  %v2875_v45 = vpack.c.bf16 %v448_v28, %v444_v27  ;;  %v455_v46 = vld [vmem:[#allocation2 + $0x278] sm:$0xff] }
  0x96   :  { %v2892_v61 = vpack.c.bf16 %v459_v49, %v455_v46 }
  0x98   :  { %v75_v53 = vpop.permute.xlu1 %74  ;;  %v72_v54 = vpop.permute.xlu0 %71 }
  0x99   :  { %vm94_vm0 = vcmp.eq.s32.totalorder %v72_v54, %v2707_v48  ;;  %vm95_vm3 = vcmp.eq.s32.totalorder %v75_v53, %v2707_v48 }
  0x9a   :  { %vm102_vm4 = vmor %vm62_vm2, %vm94_vm0 }
  0x9b   :  { %v1861_v1 = vsel %vm102_vm4, 1.0, %v2639_v4  ;;  %vm2724_vm6 = vmor %vm63_vm5, %vm95_vm3 }
  0x9c   :  { %v78_v2 = vpop.permute.xlu0 %77  ;;  %1869 = vmatmul.mubr.msk.f32.vlgmr.msra.gmra.mrb[0].mxu0 %vm146_vm1, %v1861_v1  ;;  %1877 = vmatmul.mubr.msk.f32.vlgmr.msra.gmra.mrb[0].mxu1 %vm146_vm1, %v1861_v1  ;;  %v1862_v18 = vsel %vm2724_vm6, 1.0, %v2639_v4  ;;  %v443_v1 = vld [vmem:[#allocation2 + $0x218] sm:$0xff] }
  0x9d   :  { %v46_v9 = vpop.permute.xlu1 %45  ;;  %1957 = vmatpush1.bf16.msra.mxu0 %v2712_v59  ;;  %vm96_vm7 = vcmp.eq.s32.totalorder %v78_v2, %v2707_v48  ;;  %1989 = vmatpush1.bf16.msra.mxu1 %v2714_v60  ;;  %v2823_v2 = vpack.c.bf16 %v434_v52, %v430_v51  ;;  %v2834_v15 = vpack.c.bf16 %v443_v1, %v439_v0  ;;  %v452_v51 = vld [vmem:[#allocation2 + $0x260] sm:$0xff] }
  0x9e   :  { %vm64_vm8 = vcmp.eq.s32.totalorder %v46_v9, %v2707_v48  ;;  %241 = vmatprep.mubr.f32.mxu0 %v2639_v4  ;;  %354 = vmatprep.mubr.f32.mxu1 %v2639_v4  ;;  %v442_v9 = vld [vmem:[#allocation2 + $0x210] sm:$0xff]  ;;  %v456_v52 = vld [vmem:[#allocation2 + $0x280] sm:$0xff] }
  0x9f   :  { %1959 = vmatprep.subr.bf16.mxu0 %v2718_v3  ;;  %1991 = vmatprep.subr.bf16.mxu1 %v2720_v5  ;;  %vm2753_vm9 = vmor %vm64_vm8, %vm96_vm7 }
  0xa0   :  { %v81_v19 = vpop.permute.xlu0 %80  ;;  %1870 = vmatmul.mubr.msk.f32.gmra.mrb[2].mxu0 %vm146_vm1, %v1862_v18  ;;  %1878 = vmatmul.mubr.msk.f32.gmra.mrb[2].mxu1 %vm146_vm1, %v1862_v18  ;;  %v1863_v34 = vsel %vm2753_vm9, 1.0, %v2639_v4 }
  0xa1   :  { %v49_v25 = vpop.permute.xlu1 %48  ;;  %1961 = vmatpush1.bf16.msra.mxu0 %v2730_v10  ;;  %vm97_vm10 = vcmp.eq.s32.totalorder %v81_v19, %v2707_v48  ;;  %1993 = vmatpush1.bf16.msra.mxu1 %v2736_v13 }
  0xa2   :  { %vm65_vm11 = vcmp.eq.s32.totalorder %v49_v25, %v2707_v48  ;;  %247 = vmatprep.mubr.f32.mxu0 %v2639_v4  ;;  %360 = vmatprep.mubr.f32.mxu1 %v2639_v4  ;;  %v2852_v25 = vpack.c.bf16 %v442_v9, %v438_v8 }
  0xa3   :  { %1963 = vmatprep.subr.bf16.mxu0 %v2745_v20  ;;  %1995 = vmatprep.subr.bf16.mxu1 %v2747_v21  ;;  %vm2782_vm12 = vmor %vm65_vm11, %vm97_vm10 }
  0xa4   :  { %v84_v35 = vpop.permute.xlu0 %83  ;;  %1871 = vmatmul.mubr.msk.f32.gmra.mrb[4].mxu0 %vm146_vm1, %v1863_v34  ;;  %1879 = vmatmul.mubr.msk.f32.gmra.mrb[4].mxu1 %vm146_vm1, %v1863_v34  ;;  %v1864_v53 = vsel %vm2782_vm12, 1.0, %v2639_v4  ;;  %v2861_v34 = vpack.c.bf16 %v449_v17, %v445_v16 }
  0xa5   :  { %v52_v43 = vpop.permute.xlu1 %51  ;;  %1965 = vmatpush1.bf16.msra.mxu0 %v2759_v26  ;;  %vm98_vm13 = vcmp.eq.s32.totalorder %v84_v35, %v2707_v48  ;;  %1997 = vmatpush1.bf16.msra.mxu1 %v2765_v29  ;;  %v2863_v35 = vpack.c.bf16 %v451_v24, %v447_v23 }
  0xa6   :  { %vm66_vm14 = vcmp.eq.s32.totalorder %v52_v43, %v2707_v48  ;;  %253 = vmatprep.mubr.f32.mxu0 %v2639_v4  ;;  %366 = vmatprep.mubr.f32.mxu1 %v2639_v4 }
  0xa7   :  { %1967 = vmatprep.subr.bf16.mxu0 %v2774_v36  ;;  %1999 = vmatprep.subr.bf16.mxu1 %v2776_v37  ;;  %vm2811_vm15 = vmor %vm66_vm14, %vm98_vm13 }
  0xa8   :  { %v87_v54 = vpop.permute.xlu0 %86  ;;  %1872 = vmatmul.mubr.msk.f32.gmra.mrb[6].mxu0 %vm146_vm1, %v1864_v53  ;;  %1880 = vmatmul.mubr.msk.f32.gmra.mrb[6].mxu1 %vm146_vm1, %v1864_v53  ;;  %v1865_v11 = vsel %vm2811_vm15, 1.0, %v2639_v4  ;;  %v454_v53 = vld [vmem:[#allocation2 + $0x270] sm:$0xff] }
  0xa9   :  { %v55_v62 = vpop.permute.xlu1 %54  ;;  %1969 = vmatpush1.bf16.msra.mxu0 %v2788_v44  ;;  %vm99_vm0 = vcmp.eq.s32.totalorder %v87_v54, %v2707_v48  ;;  %2001 = vmatpush1.bf16.msra.mxu1 %v2794_v47  ;;  %v458_v54 = vld [vmem:[#allocation2 + $0x290] sm:$0xff] }
  0xaa   :  { %vm67_vm2 = vcmp.eq.s32.totalorder %v55_v62, %v2707_v48  ;;  %259 = vmatprep.mubr.f32.mxu0 %v2639_v4  ;;  %372 = vmatprep.mubr.f32.mxu1 %v2639_v4  ;;  %v2900_v62 = vpack.c.bf16 %v456_v52, %v452_v51  ;;  %v2902_v0 = vpack.c.bf16 %v458_v54, %v454_v53 }
  0xab   :  { %1971 = vmatprep.subr.bf16.mxu0 %v2803_v55  ;;  %2003 = vmatprep.subr.bf16.mxu1 %v2805_v56  ;;  %vm2840_vm3 = vmor %vm67_vm2, %vm99_vm0 }
  0xac   :  { %v90_v12 = vpop.permute.xlu0 %89  ;;  %1873 = vmatmul.mubr.msk.f32.gmra.mrb[8].mxu0 %vm146_vm1, %v1865_v11  ;;  %1881 = vmatmul.mubr.msk.f32.gmra.mrb[8].mxu1 %vm146_vm1, %v1865_v11  ;;  %v1866_v32 = vsel %vm2840_vm3, 1.0, %v2639_v4 }
  0xad   :  { %v58_v19 = vpop.permute.xlu1 %57  ;;  %1973 = vmatpush1.bf16.msra.mxu0 %v2817_v63  ;;  %vm100_vm4 = vcmp.eq.s32.totalorder %v90_v12, %v2707_v48  ;;  %2005 = vmatpush1.bf16.msra.mxu1 %v2823_v2 }
  0xae   :  { %vm68_vm5 = vcmp.eq.s32.totalorder %v58_v19, %v2707_v48  ;;  %265 = vmatprep.mubr.f32.mxu0 %v2639_v4  ;;  %378 = vmatprep.mubr.f32.mxu1 %v2639_v4 }
  0xaf   :  { %1975 = vmatprep.subr.bf16.mxu0 %v2832_v14  ;;  %2007 = vmatprep.subr.bf16.mxu1 %v2834_v15  ;;  %vm2869_vm6 = vmor %vm68_vm5, %vm100_vm4 }
  0xb0   :  { %v93_v33 = vpop.permute.xlu0 %92  ;;  %1874 = vmatmul.mubr.msk.f32.gmra.mrb[10].mxu0 %vm146_vm1, %v1866_v32  ;;  %1882 = vmatmul.mubr.msk.f32.gmra.mrb[10].mxu1 %vm146_vm1, %v1866_v32  ;;  %v1867_v57 = vsel %vm2869_vm6, 1.0, %v2639_v4 }
  0xb1   :  { %v61_v43 = vpop.permute.xlu1 %60  ;;  %1977 = vmatpush1.bf16.msra.mxu0 %v2846_v22  ;;  %vm101_vm7 = vcmp.eq.s32.totalorder %v93_v33, %v2707_v48  ;;  %2009 = vmatpush1.bf16.msra.mxu1 %v2852_v25 }
  0xb2   :  { %vm69_vm8 = vcmp.eq.s32.totalorder %v61_v43, %v2707_v48  ;;  %271 = vmatprep.mubr.f32.mxu0 %v2639_v4  ;;  %384 = vmatprep.mubr.f32.mxu1 %v2639_v4 }
  0xb3   :  { %1979 = vmatprep.subr.bf16.mxu0 %v2861_v34  ;;  %2011 = vmatprep.subr.bf16.mxu1 %v2863_v35  ;;  %vm109_vm9 = vmor %vm69_vm8, %vm101_vm7 }
  0xb4   :  { %1875 = vmatmul.mubr.msk.f32.gmra.mrb[12].mxu0 %vm146_vm1, %v1867_v57  ;;  %1883 = vmatmul.mubr.msk.f32.gmra.mrb[12].mxu1 %vm146_vm1, %v1867_v57  ;;  %v1868_v1 = vsel %vm109_vm9, 1.0, %v2639_v4 }
  0xb5   :  { %1981 = vmatpush1.bf16.msra.mxu0 %v2875_v45  ;;  %2013 = vmatpush1.bf16.msra.mxu1 %v2881_v50 }
  0xb6   :  { %277 = vmatprep.mubr.f32.mxu0 %v2639_v4  ;;  %390 = vmatprep.mubr.f32.mxu1 %v2639_v4 }
  0xb7   :  { %1983 = vmatprep.subr.bf16.mxu0 %v2890_v58  ;;  %2015 = vmatprep.subr.bf16.mxu1 %v2892_v61 }
  0xb8   :  { %1876 = vmatmul.mubr.msk.f32.gmra.mrb[14].mxu0 %vm146_vm1, %v1868_v1  ;;  %1884 = vmatmul.mubr.msk.f32.gmra.mrb[14].mxu1 %vm146_vm1, %v1868_v1  ;;  %vm2642_vm1 = vmmov 0  }
  0xb9   :  { %1985 = vmatpush1.bf16.msra.mxu0 %v2900_v62  ;;  %2017 = vmatpush1.bf16.msra.mxu1 %v2902_v0 }
  0xba   :  { %524 = vmatprep.mubr.f32.mxu0 %v2639_v4  ;;  %595 = vmatprep.mubr.f32.mxu1 %v2639_v4 }
  0xbb   :  { %2019 = vmatprep.subr.bf16.mxu0 %v2689_v39  ;;  %2051 = vmatprep.subr.bf16.mxu1 %v2691_v40 }
  0xbc   :  { %525 = vmatmul.mubr.f32.vlgmr.msra.gmra.mrb[0].mxu0 %v2639_v4  ;;  %596 = vmatmul.mubr.f32.vlgmr.msra.gmra.mrb[0].mxu1 %v2639_v4 }
  0xbd   :  { %2021 = vmatpush1.bf16.msra.mxu0 %v2712_v59  ;;  %2053 = vmatpush1.bf16.msra.mxu1 %v2714_v60 }
  0xbe   :  { %2023 = vmatprep.subr.bf16.mxu0 %v2718_v3  ;;  %2055 = vmatprep.subr.bf16.mxu1 %v2720_v5 }
  0xbf   :  { %688 = vmatprep.mubr.f32.mxu0 %v2639_v4  ;;  %759 = vmatprep.mubr.f32.mxu1 %v2639_v4 }
  0xc1   :  { %2025 = vmatpush1.bf16.msra.mxu0 %v2730_v10  ;;  %2057 = vmatpush1.bf16.msra.mxu1 %v2736_v13 }
  0xc2   :  { %2027 = vmatprep.subr.bf16.mxu0 %v2745_v20  ;;  %2059 = vmatprep.subr.bf16.mxu1 %v2747_v21 }
  0xc5   :  { %2029 = vmatpush1.bf16.msra.mxu0 %v2759_v26  ;;  %2061 = vmatpush1.bf16.msra.mxu1 %v2765_v29 }
  0xc6   :  { %2031 = vmatprep.subr.bf16.mxu0 %v2774_v36  ;;  %2063 = vmatprep.subr.bf16.mxu1 %v2776_v37 }
  0xc9   :  { %2033 = vmatpush1.bf16.msra.mxu0 %v2788_v44  ;;  %2065 = vmatpush1.bf16.msra.mxu1 %v2794_v47 }
  0xca   :  { %2035 = vmatprep.subr.bf16.mxu0 %v2803_v55  ;;  %2067 = vmatprep.subr.bf16.mxu1 %v2805_v56 }
  0xcd   :  { %2037 = vmatpush1.bf16.msra.mxu0 %v2817_v63  ;;  %2069 = vmatpush1.bf16.msra.mxu1 %v2823_v2 }
  0xce   :  { %2039 = vmatprep.subr.bf16.mxu0 %v2832_v14  ;;  %2071 = vmatprep.subr.bf16.mxu1 %v2834_v15 }
  0xd1   :  { %2041 = vmatpush1.bf16.msra.mxu0 %v2846_v22  ;;  %2073 = vmatpush1.bf16.msra.mxu1 %v2852_v25 }
  0xd2   :  { %2043 = vmatprep.subr.bf16.mxu0 %v2861_v34  ;;  %2075 = vmatprep.subr.bf16.mxu1 %v2863_v35 }
  0xd5   :  { %2045 = vmatpush1.bf16.msra.mxu0 %v2875_v45  ;;  %2077 = vmatpush1.bf16.msra.mxu1 %v2881_v50 }
  0xd6   :  { %2047 = vmatprep.subr.bf16.mxu0 %v2890_v58  ;;  %2079 = vmatprep.subr.bf16.mxu1 %v2892_v61 }
  0xd9   :  { %2049 = vmatpush1.bf16.msra.mxu0 %v2900_v62  ;;  %2081 = vmatpush1.bf16.msra.mxu1 %v2902_v0 }
  0xda   :  { %2083 = vmatprep.subr.bf16.mxu0 %v2689_v39  ;;  %2115 = vmatprep.subr.bf16.mxu1 %v2691_v40 }
 0x18f   :  { %v526_v48 = vpop.f32.mrb[0].mxu0  ;;  %v597_v6 = vpop.f32.mrb[0].mxu1 }
 0x190   :  { %v606_v7 = vmul.f32 0.5, %v526_v48  ;;  %v528_v8 = vpop.f32.mrb[1].mxu0  ;;  %v599_v9 = vpop.f32.mrb[1].mxu1  ;;  %v608_v12 = vmul.f32 0.5, %v597_v6 }
 0x191   :  { %v607_v11 = vmul.f32 0.5, %v528_v8 }
 0x192   :  { %2535 = vtanh.f32 %v606_v7 }
 0x193   :  { %2537 = vtanh.f32 %v607_v11 }
 0x194   :  { %2539 = vtanh.f32 %v599_v9 }
 0x195   :  { %2541 = vtanh.f32 %v608_v12 }
 0x19c   :  { %v2536_v16 = vpop.eup %2535 }
 0x19d   :  { %v612_v17 = vmul.f32 0.5, %v2536_v16  ;;  %v2538_v18 = vpop.eup %2537 }
 0x19e   :  { %v613_v23 = vmul.f32 0.5, %v2538_v18  ;;  %v2540_v24 = vpop.eup %2539 }
 0x19f   :  { %v615_v19 = vadd.f32 0.5, %v612_v17  ;;  %v2542_v32 = vpop.eup %2541 }
 0x1a0   :  { %v616_v27 = vadd.f32 0.5, %v613_v23  ;;  %v614_v33 = vmul.f32 0.5, %v2542_v32 }
 0x1a1   :  { %v620_v28 = vmul.f32 %v2540_v24, %v615_v19 }
 0x1a2   :  { %v619_v30 = vmul.f32 0.0, %v616_v27  ;;  %v617_v38 = vadd.f32 0.5, %v614_v33 }
 0x1a4   :  { %v621_v31 = vadd.f32 %v620_v28, %v619_v30 }
 0x1a6   :  { %2543 = vtanh.f32 %v621_v31 }
 0x1b0   :  { %v2544_v41 = vpop.eup %2543 }
 0x1b1   :  { %v623_v42 = vmul.f32 %v2544_v41, %v617_v38 }
 0x1b3   :  { %689 = vmatmul.mubr.f32.vlgmr.msra.gmra.mrb[2].mxu0 %v623_v42  ;;  %760 = vmatmul.mubr.f32.vlgmr.msra.gmra.mrb[2].mxu1 %v623_v42 }
 0x1b4   :  { %2085 = vmatpush1.bf16.msra.mxu0 %v2712_v59  ;;  %2117 = vmatpush1.bf16.msra.mxu1 %v2714_v60 }
 0x1b5   :  { %2087 = vmatprep.subr.bf16.mxu0 %v2718_v3  ;;  %2119 = vmatprep.subr.bf16.mxu1 %v2720_v5 }
 0x1b6   :  { %852 = vmatprep.mubr.f32.mxu0 %v2639_v4  ;;  %923 = vmatprep.mubr.f32.mxu1 %v2639_v4 }
 0x1b8   :  { %2089 = vmatpush1.bf16.msra.mxu0 %v2730_v10  ;;  %2121 = vmatpush1.bf16.msra.mxu1 %v2736_v13 }
 0x1b9   :  { %2091 = vmatprep.subr.bf16.mxu0 %v2745_v20  ;;  %2123 = vmatprep.subr.bf16.mxu1 %v2747_v21 }
 0x1bc   :  { %2093 = vmatpush1.bf16.msra.mxu0 %v2759_v26  ;;  %2125 = vmatpush1.bf16.msra.mxu1 %v2765_v29 }
 0x1bd   :  { %2095 = vmatprep.subr.bf16.mxu0 %v2774_v36  ;;  %2127 = vmatprep.subr.bf16.mxu1 %v2776_v37 }
 0x1c0   :  { %2097 = vmatpush1.bf16.msra.mxu0 %v2788_v44  ;;  %2129 = vmatpush1.bf16.msra.mxu1 %v2794_v47 }
 0x1c1   :  { %2099 = vmatprep.subr.bf16.mxu0 %v2803_v55  ;;  %2131 = vmatprep.subr.bf16.mxu1 %v2805_v56 }
 0x1c4   :  { %2101 = vmatpush1.bf16.msra.mxu0 %v2817_v63  ;;  %2133 = vmatpush1.bf16.msra.mxu1 %v2823_v2 }
 0x1c5   :  { %2103 = vmatprep.subr.bf16.mxu0 %v2832_v14  ;;  %2135 = vmatprep.subr.bf16.mxu1 %v2834_v15 }
 0x1c8   :  { %2105 = vmatpush1.bf16.msra.mxu0 %v2846_v22  ;;  %2137 = vmatpush1.bf16.msra.mxu1 %v2852_v25 }
 0x1c9   :  { %2107 = vmatprep.subr.bf16.mxu0 %v2861_v34  ;;  %2139 = vmatprep.subr.bf16.mxu1 %v2863_v35 }
 0x1cc   :  { %2109 = vmatpush1.bf16.msra.mxu0 %v2875_v45  ;;  %2141 = vmatpush1.bf16.msra.mxu1 %v2881_v50 }
 0x1cd   :  { %2111 = vmatprep.subr.bf16.mxu0 %v2890_v58  ;;  %2143 = vmatprep.subr.bf16.mxu1 %v2892_v61 }
 0x1d0   :  { %2113 = vmatpush1.bf16.msra.mxu0 %v2900_v62  ;;  %2145 = vmatpush1.bf16.msra.mxu1 %v2902_v0 }
 0x1d1   :  { %2147 = vmatprep.subr.bf16.mxu0 %v2689_v39  ;;  %2179 = vmatprep.subr.bf16.mxu1 %v2691_v40 }
 0x286   :  { %v690_v43 = vpop.f32.mrb[2].mxu0  ;;  %v761_v46 = vpop.f32.mrb[2].mxu1 }
 0x287   :  { %v770_v49 = vmul.f32 0.5, %v690_v43  ;;  %v692_v51 = vpop.f32.mrb[3].mxu0  ;;  %v763_v52 = vpop.f32.mrb[3].mxu1  ;;  %v772_v54 = vmul.f32 0.5, %v761_v46 }
 0x288   :  { %v771_v53 = vmul.f32 0.5, %v692_v51 }
 0x289   :  { %2545 = vtanh.f32 %v770_v49 }
 0x28a   :  { %2547 = vtanh.f32 %v771_v53 }
 0x28b   :  { %2549 = vtanh.f32 %v763_v52 }
 0x28c   :  { %2551 = vtanh.f32 %v772_v54 }
 0x293   :  { %v2546_v57 = vpop.eup %2545 }
 0x294   :  { %v776_v1 = vmul.f32 0.5, %v2546_v57  ;;  %v2548_v48 = vpop.eup %2547 }
 0x295   :  { %v777_v7 = vmul.f32 0.5, %v2548_v48  ;;  %v2550_v8 = vpop.eup %2549 }
 0x296   :  { %v779_v6 = vadd.f32 0.5, %v776_v1  ;;  %v2552_v17 = vpop.eup %2551 }
 0x297   :  { %v780_v9 = vadd.f32 0.5, %v777_v7  ;;  %v778_v18 = vmul.f32 0.5, %v2552_v17 }
 0x298   :  { %v784_v11 = vmul.f32 %v2550_v8, %v779_v6 }
 0x299   :  { %v783_v12 = vmul.f32 %v780_v9, %v621_v31  ;;  %v781_v19 = vadd.f32 0.5, %v778_v18 }
 0x29b   :  { %v785_v16 = vadd.f32 %v784_v11, %v783_v12 }
 0x29d   :  { %2553 = vtanh.f32 %v785_v16 }
 0x2a7   :  { %v2554_v23 = vpop.eup %2553 }
 0x2a8   :  { %v787_v24 = vmul.f32 %v2554_v23, %v781_v19 }
 0x2aa   :  { %853 = vmatmul.mubr.f32.vlgmr.msra.gmra.mrb[4].mxu0 %v787_v24  ;;  %924 = vmatmul.mubr.f32.vlgmr.msra.gmra.mrb[4].mxu1 %v787_v24 }
 0x2ab   :  { %2149 = vmatpush1.bf16.msra.mxu0 %v2712_v59  ;;  %2181 = vmatpush1.bf16.msra.mxu1 %v2714_v60 }
 0x2ac   :  { %2151 = vmatprep.subr.bf16.mxu0 %v2718_v3  ;;  %2183 = vmatprep.subr.bf16.mxu1 %v2720_v5 }
 0x2ad   :  { %1016 = vmatprep.mubr.f32.mxu0 %v2639_v4  ;;  %1087 = vmatprep.mubr.f32.mxu1 %v2639_v4 }
 0x2af   :  { %2153 = vmatpush1.bf16.msra.mxu0 %v2730_v10  ;;  %2185 = vmatpush1.bf16.msra.mxu1 %v2736_v13 }
 0x2b0   :  { %2155 = vmatprep.subr.bf16.mxu0 %v2745_v20  ;;  %2187 = vmatprep.subr.bf16.mxu1 %v2747_v21 }
 0x2b3   :  { %2157 = vmatpush1.bf16.msra.mxu0 %v2759_v26  ;;  %2189 = vmatpush1.bf16.msra.mxu1 %v2765_v29 }
 0x2b4   :  { %2159 = vmatprep.subr.bf16.mxu0 %v2774_v36  ;;  %2191 = vmatprep.subr.bf16.mxu1 %v2776_v37 }
 0x2b7   :  { %2161 = vmatpush1.bf16.msra.mxu0 %v2788_v44  ;;  %2193 = vmatpush1.bf16.msra.mxu1 %v2794_v47 }
 0x2b8   :  { %2163 = vmatprep.subr.bf16.mxu0 %v2803_v55  ;;  %2195 = vmatprep.subr.bf16.mxu1 %v2805_v56 }
 0x2bb   :  { %2165 = vmatpush1.bf16.msra.mxu0 %v2817_v63  ;;  %2197 = vmatpush1.bf16.msra.mxu1 %v2823_v2 }
 0x2bc   :  { %2167 = vmatprep.subr.bf16.mxu0 %v2832_v14  ;;  %2199 = vmatprep.subr.bf16.mxu1 %v2834_v15 }
 0x2bf   :  { %2169 = vmatpush1.bf16.msra.mxu0 %v2846_v22  ;;  %2201 = vmatpush1.bf16.msra.mxu1 %v2852_v25 }
 0x2c0   :  { %2171 = vmatprep.subr.bf16.mxu0 %v2861_v34  ;;  %2203 = vmatprep.subr.bf16.mxu1 %v2863_v35 }
 0x2c3   :  { %2173 = vmatpush1.bf16.msra.mxu0 %v2875_v45  ;;  %2205 = vmatpush1.bf16.msra.mxu1 %v2881_v50 }
 0x2c4   :  { %2175 = vmatprep.subr.bf16.mxu0 %v2890_v58  ;;  %2207 = vmatprep.subr.bf16.mxu1 %v2892_v61 }
 0x2c7   :  { %2177 = vmatpush1.bf16.msra.mxu0 %v2900_v62  ;;  %2209 = vmatpush1.bf16.msra.mxu1 %v2902_v0 }
 0x2c8   :  { %2211 = vmatprep.subr.bf16.mxu0 %v2689_v39  ;;  %2243 = vmatprep.subr.bf16.mxu1 %v2691_v40 }
 0x37d   :  { %v854_v27 = vpop.f32.mrb[4].mxu0  ;;  %v925_v28 = vpop.f32.mrb[4].mxu1 }
 0x37e   :  { %v934_v30 = vmul.f32 0.5, %v854_v27  ;;  %v856_v31 = vpop.f32.mrb[5].mxu0  ;;  %v927_v32 = vpop.f32.mrb[5].mxu1  ;;  %v936_v38 = vmul.f32 0.5, %v925_v28 }
 0x37f   :  { %v935_v33 = vmul.f32 0.5, %v856_v31 }
 0x380   :  { %2555 = vtanh.f32 %v934_v30 }
 0x381   :  { %2557 = vtanh.f32 %v935_v33 }
 0x382   :  { %2559 = vtanh.f32 %v927_v32 }
 0x383   :  { %2561 = vtanh.f32 %v936_v38 }
 0x38a   :  { %v2556_v41 = vpop.eup %2555 }
 0x38b   :  { %v940_v42 = vmul.f32 0.5, %v2556_v41  ;;  %v2558_v43 = vpop.eup %2557 }
 0x38c   :  { %v941_v49 = vmul.f32 0.5, %v2558_v43  ;;  %v2560_v51 = vpop.eup %2559 }
 0x38d   :  { %v943_v46 = vadd.f32 0.5, %v940_v42  ;;  %v2562_v1 = vpop.eup %2561 }
 0x38e   :  { %v944_v52 = vadd.f32 0.5, %v941_v49  ;;  %v942_v48 = vmul.f32 0.5, %v2562_v1 }
 0x38f   :  { %v948_v53 = vmul.f32 %v2560_v51, %v943_v46 }
 0x390   :  { %v947_v54 = vmul.f32 %v944_v52, %v785_v16  ;;  %v945_v6 = vadd.f32 0.5, %v942_v48 }
 0x392   :  { %v949_v57 = vadd.f32 %v948_v53, %v947_v54 }
 0x394   :  { %2563 = vtanh.f32 %v949_v57 }
 0x39e   :  { %v2564_v7 = vpop.eup %2563 }
 0x39f   :  { %v951_v8 = vmul.f32 %v2564_v7, %v945_v6 }
 0x3a1   :  { %1017 = vmatmul.mubr.f32.vlgmr.msra.gmra.mrb[6].mxu0 %v951_v8  ;;  %1088 = vmatmul.mubr.f32.vlgmr.msra.gmra.mrb[6].mxu1 %v951_v8 }
 0x3a2   :  { %2213 = vmatpush1.bf16.msra.mxu0 %v2712_v59  ;;  %2245 = vmatpush1.bf16.msra.mxu1 %v2714_v60 }
 0x3a3   :  { %2215 = vmatprep.subr.bf16.mxu0 %v2718_v3  ;;  %2247 = vmatprep.subr.bf16.mxu1 %v2720_v5 }
 0x3a4   :  { %1180 = vmatprep.mubr.f32.mxu0 %v2639_v4  ;;  %1251 = vmatprep.mubr.f32.mxu1 %v2639_v4 }
 0x3a6   :  { %2217 = vmatpush1.bf16.msra.mxu0 %v2730_v10  ;;  %2249 = vmatpush1.bf16.msra.mxu1 %v2736_v13 }
 0x3a7   :  { %2219 = vmatprep.subr.bf16.mxu0 %v2745_v20  ;;  %2251 = vmatprep.subr.bf16.mxu1 %v2747_v21 }
 0x3aa   :  { %2221 = vmatpush1.bf16.msra.mxu0 %v2759_v26  ;;  %2253 = vmatpush1.bf16.msra.mxu1 %v2765_v29 }
 0x3ab   :  { %2223 = vmatprep.subr.bf16.mxu0 %v2774_v36  ;;  %2255 = vmatprep.subr.bf16.mxu1 %v2776_v37 }
 0x3ae   :  { %2225 = vmatpush1.bf16.msra.mxu0 %v2788_v44  ;;  %2257 = vmatpush1.bf16.msra.mxu1 %v2794_v47 }
 0x3af   :  { %2227 = vmatprep.subr.bf16.mxu0 %v2803_v55  ;;  %2259 = vmatprep.subr.bf16.mxu1 %v2805_v56 }
 0x3b2   :  { %2229 = vmatpush1.bf16.msra.mxu0 %v2817_v63  ;;  %2261 = vmatpush1.bf16.msra.mxu1 %v2823_v2 }
 0x3b3   :  { %2231 = vmatprep.subr.bf16.mxu0 %v2832_v14  ;;  %2263 = vmatprep.subr.bf16.mxu1 %v2834_v15 }
 0x3b6   :  { %2233 = vmatpush1.bf16.msra.mxu0 %v2846_v22  ;;  %2265 = vmatpush1.bf16.msra.mxu1 %v2852_v25 }
 0x3b7   :  { %2235 = vmatprep.subr.bf16.mxu0 %v2861_v34  ;;  %2267 = vmatprep.subr.bf16.mxu1 %v2863_v35 }
 0x3ba   :  { %2237 = vmatpush1.bf16.msra.mxu0 %v2875_v45  ;;  %2269 = vmatpush1.bf16.msra.mxu1 %v2881_v50 }
 0x3bb   :  { %2239 = vmatprep.subr.bf16.mxu0 %v2890_v58  ;;  %2271 = vmatprep.subr.bf16.mxu1 %v2892_v61 }
 0x3be   :  { %2241 = vmatpush1.bf16.msra.mxu0 %v2900_v62  ;;  %2273 = vmatpush1.bf16.msra.mxu1 %v2902_v0 }
 0x3bf   :  { %2275 = vmatprep.subr.bf16.mxu0 %v2689_v39  ;;  %2307 = vmatprep.subr.bf16.mxu1 %v2691_v40 }
 0x474   :  { %v1018_v9 = vpop.f32.mrb[6].mxu0  ;;  %v1089_v11 = vpop.f32.mrb[6].mxu1 }
 0x475   :  { %v1098_v12 = vmul.f32 0.5, %v1018_v9  ;;  %v1020_v16 = vpop.f32.mrb[7].mxu0  ;;  %v1091_v17 = vpop.f32.mrb[7].mxu1  ;;  %v1100_v19 = vmul.f32 0.5, %v1089_v11 }
 0x476   :  { %v1099_v18 = vmul.f32 0.5, %v1020_v16 }
 0x477   :  { %2565 = vtanh.f32 %v1098_v12 }
 0x478   :  { %2567 = vtanh.f32 %v1099_v18 }
 0x479   :  { %2569 = vtanh.f32 %v1091_v17 }
 0x47a   :  { %2571 = vtanh.f32 %v1100_v19 }
 0x481   :  { %v2566_v23 = vpop.eup %2565 }
 0x482   :  { %v1104_v24 = vmul.f32 0.5, %v2566_v23  ;;  %v2568_v27 = vpop.eup %2567 }
 0x483   :  { %v1105_v30 = vmul.f32 0.5, %v2568_v27  ;;  %v2570_v31 = vpop.eup %2569 }
 0x484   :  { %v1107_v28 = vadd.f32 0.5, %v1104_v24  ;;  %v2572_v42 = vpop.eup %2571 }
 0x485   :  { %v1108_v32 = vadd.f32 0.5, %v1105_v30  ;;  %v1106_v43 = vmul.f32 0.5, %v2572_v42 }
 0x486   :  { %v1112_v33 = vmul.f32 %v2570_v31, %v1107_v28 }
 0x487   :  { %v1111_v38 = vmul.f32 %v1108_v32, %v949_v57  ;;  %v1109_v46 = vadd.f32 0.5, %v1106_v43 }
 0x489   :  { %v1113_v41 = vadd.f32 %v1112_v33, %v1111_v38 }
 0x48b   :  { %2573 = vtanh.f32 %v1113_v41 }
 0x495   :  { %v2574_v49 = vpop.eup %2573 }
 0x496   :  { %v1115_v51 = vmul.f32 %v2574_v49, %v1109_v46 }
 0x498   :  { %1181 = vmatmul.mubr.f32.vlgmr.msra.gmra.mrb[8].mxu0 %v1115_v51  ;;  %1252 = vmatmul.mubr.f32.vlgmr.msra.gmra.mrb[8].mxu1 %v1115_v51 }
 0x499   :  { %2277 = vmatpush1.bf16.msra.mxu0 %v2712_v59  ;;  %2309 = vmatpush1.bf16.msra.mxu1 %v2714_v60 }
 0x49a   :  { %2279 = vmatprep.subr.bf16.mxu0 %v2718_v3  ;;  %2311 = vmatprep.subr.bf16.mxu1 %v2720_v5 }
 0x49b   :  { %1344 = vmatprep.mubr.f32.mxu0 %v2639_v4  ;;  %1415 = vmatprep.mubr.f32.mxu1 %v2639_v4 }
 0x49d   :  { %2281 = vmatpush1.bf16.msra.mxu0 %v2730_v10  ;;  %2313 = vmatpush1.bf16.msra.mxu1 %v2736_v13 }
 0x49e   :  { %2283 = vmatprep.subr.bf16.mxu0 %v2745_v20  ;;  %2315 = vmatprep.subr.bf16.mxu1 %v2747_v21 }
 0x4a1   :  { %2285 = vmatpush1.bf16.msra.mxu0 %v2759_v26  ;;  %2317 = vmatpush1.bf16.msra.mxu1 %v2765_v29 }
 0x4a2   :  { %2287 = vmatprep.subr.bf16.mxu0 %v2774_v36  ;;  %2319 = vmatprep.subr.bf16.mxu1 %v2776_v37 }
 0x4a5   :  { %2289 = vmatpush1.bf16.msra.mxu0 %v2788_v44  ;;  %2321 = vmatpush1.bf16.msra.mxu1 %v2794_v47 }
 0x4a6   :  { %2291 = vmatprep.subr.bf16.mxu0 %v2803_v55  ;;  %2323 = vmatprep.subr.bf16.mxu1 %v2805_v56 }
 0x4a9   :  { %2293 = vmatpush1.bf16.msra.mxu0 %v2817_v63  ;;  %2325 = vmatpush1.bf16.msra.mxu1 %v2823_v2 }
 0x4aa   :  { %2295 = vmatprep.subr.bf16.mxu0 %v2832_v14  ;;  %2327 = vmatprep.subr.bf16.mxu1 %v2834_v15 }
 0x4ad   :  { %2297 = vmatpush1.bf16.msra.mxu0 %v2846_v22  ;;  %2329 = vmatpush1.bf16.msra.mxu1 %v2852_v25 }
 0x4ae   :  { %2299 = vmatprep.subr.bf16.mxu0 %v2861_v34  ;;  %2331 = vmatprep.subr.bf16.mxu1 %v2863_v35 }
 0x4b1   :  { %2301 = vmatpush1.bf16.msra.mxu0 %v2875_v45  ;;  %2333 = vmatpush1.bf16.msra.mxu1 %v2881_v50 }
 0x4b2   :  { %2303 = vmatprep.subr.bf16.mxu0 %v2890_v58  ;;  %2335 = vmatprep.subr.bf16.mxu1 %v2892_v61 }
 0x4b5   :  { %2305 = vmatpush1.bf16.msra.mxu0 %v2900_v62  ;;  %2337 = vmatpush1.bf16.msra.mxu1 %v2902_v0 }
 0x4b6   :  { %2339 = vmatprep.subr.bf16.mxu0 %v2689_v39  ;;  %2371 = vmatprep.subr.bf16.mxu1 %v2691_v40 }
 0x56b   :  { %v1182_v52 = vpop.f32.mrb[8].mxu0  ;;  %v1253_v53 = vpop.f32.mrb[8].mxu1 }
 0x56c   :  { %v1262_v54 = vmul.f32 0.5, %v1182_v52  ;;  %v1184_v57 = vpop.f32.mrb[9].mxu0  ;;  %v1255_v1 = vpop.f32.mrb[9].mxu1  ;;  %v1264_v6 = vmul.f32 0.5, %v1253_v53 }
 0x56d   :  { %v1263_v48 = vmul.f32 0.5, %v1184_v57 }
 0x56e   :  { %2575 = vtanh.f32 %v1262_v54 }
 0x56f   :  { %2577 = vtanh.f32 %v1263_v48 }
 0x570   :  { %2579 = vtanh.f32 %v1255_v1 }
 0x571   :  { %2581 = vtanh.f32 %v1264_v6 }
 0x578   :  { %v2576_v7 = vpop.eup %2575 }
 0x579   :  { %v1268_v8 = vmul.f32 0.5, %v2576_v7  ;;  %v2578_v9 = vpop.eup %2577 }
 0x57a   :  { %v1269_v12 = vmul.f32 0.5, %v2578_v9  ;;  %v2580_v16 = vpop.eup %2579 }
 0x57b   :  { %v1271_v11 = vadd.f32 0.5, %v1268_v8  ;;  %v2582_v24 = vpop.eup %2581 }
 0x57c   :  { %v1272_v17 = vadd.f32 0.5, %v1269_v12  ;;  %v1270_v27 = vmul.f32 0.5, %v2582_v24  ;;  %v1769_v12 = vld [vmem:[%s3224_s2 + $0x28] sm:$0xff] }
 0x57d   :  { %v1276_v18 = vmul.f32 %v2580_v16, %v1271_v11  ;;  %v1773_v24 = vld [vmem:[%s3224_s2 + $0x48] sm:$0xff] }
 0x57e   :  { %v1275_v19 = vmul.f32 %v1272_v17, %v1113_v41  ;;  %v1273_v28 = vadd.f32 0.5, %v1270_v27  ;;  %v1770_v17 = vld [vmem:[%s3224_s2 + $0x30] sm:$0xff] }
 0x580   :  { %v1277_v23 = vadd.f32 %v1276_v18, %v1275_v19  ;;  %v1771_v18 = vld [vmem:[%s3224_s2 + $0x38] sm:$0xff] }
 0x581   :  { %v2476_v19 = vpack.c.bf16 %v1771_v18, %v1770_v17 }
 0x582   :  { %2583 = vtanh.f32 %v1277_v23 }
 0x58c   :  { %v2584_v30 = vpop.eup %2583 }
 0x58d   :  { %v1279_v31 = vmul.f32 %v2584_v30, %v1273_v28  ;;  %v1774_v28 = vld [vmem:[%s3224_s2 + $0x50] sm:$0xff]  ;;  %v1775_v30 = vld [vmem:[%s3224_s2 + $0x58] sm:$0xff] }
 0x58f   :  { %1345 = vmatmul.mubr.f32.vlgmr.msra.gmra.mrb[10].mxu0 %v1279_v31  ;;  %1416 = vmatmul.mubr.f32.vlgmr.msra.gmra.mrb[10].mxu1 %v1279_v31  ;;  %v2482_v31 = vpack.c.bf16 %v1775_v30, %v1774_v28 }
 0x590   :  { %2341 = vmatpush1.bf16.msra.mxu0 %v2712_v59  ;;  %2373 = vmatpush1.bf16.msra.mxu1 %v2714_v60 }
 0x591   :  { %2343 = vmatprep.subr.bf16.mxu0 %v2718_v3  ;;  %2375 = vmatprep.subr.bf16.mxu1 %v2720_v5 }
 0x592   :  { %1508 = vmatprep.mubr.f32.mxu0 %v2639_v4  ;;  %1579 = vmatprep.mubr.f32.mxu1 %v2639_v4 }
 0x594   :  { %2345 = vmatpush1.bf16.msra.mxu0 %v2730_v10  ;;  %2377 = vmatpush1.bf16.msra.mxu1 %v2736_v13 }
 0x595   :  { %2347 = vmatprep.subr.bf16.mxu0 %v2745_v20  ;;  %2379 = vmatprep.subr.bf16.mxu1 %v2747_v21 }
 0x598   :  { %2349 = vmatpush1.bf16.msra.mxu0 %v2759_v26  ;;  %2381 = vmatpush1.bf16.msra.mxu1 %v2765_v29 }
 0x599   :  { %2351 = vmatprep.subr.bf16.mxu0 %v2774_v36  ;;  %2383 = vmatprep.subr.bf16.mxu1 %v2776_v37 }
 0x59c   :  { %2353 = vmatpush1.bf16.msra.mxu0 %v2788_v44  ;;  %2385 = vmatpush1.bf16.msra.mxu1 %v2794_v47 }
 0x59d   :  { %2355 = vmatprep.subr.bf16.mxu0 %v2803_v55  ;;  %2387 = vmatprep.subr.bf16.mxu1 %v2805_v56 }
 0x5a0   :  { %2357 = vmatpush1.bf16.msra.mxu0 %v2817_v63  ;;  %2389 = vmatpush1.bf16.msra.mxu1 %v2823_v2 }
 0x5a1   :  { %2359 = vmatprep.subr.bf16.mxu0 %v2832_v14  ;;  %2391 = vmatprep.subr.bf16.mxu1 %v2834_v15 }
 0x5a4   :  { %2361 = vmatpush1.bf16.msra.mxu0 %v2846_v22  ;;  %2393 = vmatpush1.bf16.msra.mxu1 %v2852_v25 }
 0x5a5   :  { %2363 = vmatprep.subr.bf16.mxu0 %v2861_v34  ;;  %2395 = vmatprep.subr.bf16.mxu1 %v2863_v35 }
 0x5a8   :  { %2365 = vmatpush1.bf16.msra.mxu0 %v2875_v45  ;;  %2397 = vmatpush1.bf16.msra.mxu1 %v2881_v50 }
 0x5a9   :  { %2367 = vmatprep.subr.bf16.mxu0 %v2890_v58  ;;  %2399 = vmatprep.subr.bf16.mxu1 %v2892_v61 }
 0x5ac   :  { %2369 = vmatpush1.bf16.msra.mxu0 %v2900_v62  ;;  %2401 = vmatpush1.bf16.msra.mxu1 %v2902_v0 }
 0x5ad   :  { %2403 = vmatprep.subr.bf16.mxu0 %v2689_v39  ;;  %2435 = vmatprep.subr.bf16.mxu1 %v2691_v40 }
 0x662   :  { %v1346_v32 = vpop.f32.mrb[10].mxu0  ;;  %v1417_v33 = vpop.f32.mrb[10].mxu1 }
 0x663   :  { %v1426_v38 = vmul.f32 0.5, %v1346_v32  ;;  %v1348_v41 = vpop.f32.mrb[11].mxu0  ;;  %v1419_v42 = vpop.f32.mrb[11].mxu1  ;;  %v1428_v46 = vmul.f32 0.5, %v1417_v33  ;;  %v1776_v32 = vld [vmem:[%s3224_s2 + $0x60] sm:$0xff]  ;;  %v1777_v33 = vld [vmem:[%s3224_s2 + $0x68] sm:$0xff] }
 0x664   :  { %v1427_v43 = vmul.f32 0.5, %v1348_v41  ;;  %v1778_v41 = vld [vmem:[%s3224_s2 + $0x70] sm:$0xff] }
 0x665   :  { %2585 = vtanh.f32 %v1426_v38  ;;  %v2485_v38 = vpack.c.bf16 %v1777_v33, %v1776_v32 }
 0x666   :  { %2587 = vtanh.f32 %v1427_v43 }
 0x667   :  { %2589 = vtanh.f32 %v1419_v42  ;;  %v1779_v42 = vld [vmem:[%s3224_s2 + $0x78] sm:$0xff] }
 0x668   :  { %2591 = vtanh.f32 %v1428_v46  ;;  %v2488_v43 = vpack.c.bf16 %v1779_v42, %v1778_v41 }
 0x66f   :  { %v2586_v49 = vpop.eup %2585 }
 0x670   :  { %v1432_v51 = vmul.f32 0.5, %v2586_v49  ;;  %v2588_v52 = vpop.eup %2587 }
 0x671   :  { %v1433_v54 = vmul.f32 0.5, %v2588_v52  ;;  %v2590_v57 = vpop.eup %2589 }
 0x672   :  { %v1435_v53 = vadd.f32 0.5, %v1432_v51  ;;  %v2592_v6 = vpop.eup %2591 }
 0x673   :  { %v1436_v39 = vadd.f32 0.5, %v1433_v54  ;;  %v1434_v7 = vmul.f32 0.5, %v2592_v6 }
 0x674   :  { %v1440_v1 = vmul.f32 %v2590_v57, %v1435_v53 }
 0x675   :  { %v1439_v40 = vmul.f32 %v1436_v39, %v1277_v23  ;;  %v1437_v8 = vadd.f32 0.5, %v1434_v7  ;;  %v1772_v23 = vld [vmem:[%s3224_s2 + $0x40] sm:$0xff] }
 0x676   :  { %v2479_v27 = vpack.c.bf16 %v1773_v24, %v1772_v23 }
 0x677   :  { %v1441_v48 = vadd.f32 %v1440_v1, %v1439_v40 }
 0x679   :  { %2593 = vtanh.f32 %v1441_v48 }
 0x683   :  { %v2594_v9 = vpop.eup %2593 }
 0x684   :  { %v1443_v11 = vmul.f32 %v2594_v9, %v1437_v8 }
 0x686   :  { %1509 = vmatmul.mubr.f32.vlgmr.msra.gmra.mrb[12].mxu0 %v1443_v11  ;;  %1580 = vmatmul.mubr.f32.vlgmr.msra.gmra.mrb[12].mxu1 %v1443_v11  ;;  %v1885_v11 = vld [vmem:[%s3224_s2 + $0x80] ss:$0 sm:$0xff] }
 0x687   :  { %2405 = vmatpush1.bf16.msra.mxu0 %v2712_v59  ;;  %2437 = vmatpush1.bf16.msra.mxu1 %v2714_v60  ;;  %v2641_v59 = vmov 0.0|0.0  }
 0x688   :  { %2407 = vmatprep.subr.bf16.mxu0 %v2718_v3  ;;  %2439 = vmatprep.subr.bf16.mxu1 %v2720_v5 }
 0x689   :  { %1672 = vmatprep.mubr.f32.mxu0 %v2639_v4  ;;  %1743 = vmatprep.mubr.f32.mxu1 %v2639_v4 }
 0x68b   :  { %2409 = vmatpush1.bf16.msra.mxu0 %v2730_v10  ;;  %2441 = vmatpush1.bf16.msra.mxu1 %v2736_v13 }
 0x68c   :  { %2411 = vmatprep.subr.bf16.mxu0 %v2745_v20  ;;  %2443 = vmatprep.subr.bf16.mxu1 %v2747_v21 }
 0x68f   :  { %2413 = vmatpush1.bf16.msra.mxu0 %v2759_v26  ;;  %2445 = vmatpush1.bf16.msra.mxu1 %v2765_v29 }
 0x690   :  { %2415 = vmatprep.subr.bf16.mxu0 %v2774_v36  ;;  %2447 = vmatprep.subr.bf16.mxu1 %v2776_v37 }
 0x693   :  { %2417 = vmatpush1.bf16.msra.mxu0 %v2788_v44  ;;  %2449 = vmatpush1.bf16.msra.mxu1 %v2794_v47 }
 0x694   :  { %2419 = vmatprep.subr.bf16.mxu0 %v2803_v55  ;;  %2451 = vmatprep.subr.bf16.mxu1 %v2805_v56 }
 0x697   :  { %2421 = vmatpush1.bf16.msra.mxu0 %v2817_v63  ;;  %2453 = vmatpush1.bf16.msra.mxu1 %v2823_v2 }
 0x698   :  { %2423 = vmatprep.subr.bf16.mxu0 %v2832_v14  ;;  %2455 = vmatprep.subr.bf16.mxu1 %v2834_v15 }
 0x69b   :  { %2425 = vmatpush1.bf16.msra.mxu0 %v2846_v22  ;;  %2457 = vmatpush1.bf16.msra.mxu1 %v2852_v25  ;;  %v1764_v22 = vld [vmem:[%s3224_s2] sm:$0xff]  ;;  %v1765_v25 = vld [vmem:[%s3224_s2 + $0x8] sm:$0xff] }
 0x69c   :  { %2427 = vmatprep.subr.bf16.mxu0 %v2861_v34  ;;  %2459 = vmatprep.subr.bf16.mxu1 %v2863_v35 }
 0x69f   :  { %2429 = vmatpush1.bf16.msra.mxu0 %v2875_v45  ;;  %2461 = vmatpush1.bf16.msra.mxu1 %v2881_v50  ;;  %v2467_v45 = vpack.c.bf16 %v1765_v25, %v1764_v22 }
 0x6a0   :  { %2431 = vmatprep.subr.bf16.mxu0 %v2890_v58  ;;  %2463 = vmatprep.subr.bf16.mxu1 %v2892_v61  ;;  %v1766_v58 = vld [vmem:[%s3224_s2 + $0x10] sm:$0xff]  ;;  %v1767_v61 = vld [vmem:[%s3224_s2 + $0x18] sm:$0xff] }
 0x6a3   :  { %2433 = vmatpush1.bf16.msra.mxu0 %v2900_v62  ;;  %2465 = vmatpush1.bf16.msra.mxu1 %v2902_v0  ;;  %v2470_v62 = vpack.c.bf16 %v1767_v61, %v1766_v58  ;;  %v1768_v0 = vld [vmem:[%s3224_s2 + $0x20] sm:$0xff] }
 0x6a4   :  { %2466 = vmatprep.subr.bf16.mxu0 %v2641_v59  ;;  %v2473_v16 = vpack.c.bf16 %v1769_v12, %v1768_v0 }
 0x759   :  { %v1510_v60 = vpop.f32.mrb[12].mxu0  ;;  %v1581_v3 = vpop.f32.mrb[12].mxu1 }
 0x75a   :  { %v1590_v5 = vmul.f32 0.5, %v1510_v60  ;;  %v1512_v10 = vpop.f32.mrb[13].mxu0  ;;  %v1583_v13 = vpop.f32.mrb[13].mxu1  ;;  %v1592_v21 = vmul.f32 0.5, %v1581_v3 }
 0x75b   :  { %v1591_v20 = vmul.f32 0.5, %v1512_v10 }
 0x75c   :  { %2595 = vtanh.f32 %v1590_v5 }
 0x75d   :  { %2597 = vtanh.f32 %v1591_v20 }
 0x75e   :  { %2599 = vtanh.f32 %v1583_v13 }
 0x75f   :  { %2601 = vtanh.f32 %v1592_v21 }
 0x766   :  { %v2596_v26 = vpop.eup %2595 }
 0x767   :  { %v1596_v29 = vmul.f32 0.5, %v2596_v26  ;;  %v2598_v36 = vpop.eup %2597 }
 0x768   :  { %v1597_v44 = vmul.f32 0.5, %v2598_v36  ;;  %v2600_v47 = vpop.eup %2599 }
 0x769   :  { %v1599_v37 = vadd.f32 0.5, %v1596_v29  ;;  %v2602_v14 = vpop.eup %2601 }
 0x76a   :  { %v1600_v55 = vadd.f32 0.5, %v1597_v44  ;;  %v1598_v15 = vmul.f32 0.5, %v2602_v14 }
 0x76b   :  { %v1604_v56 = vmul.f32 %v2600_v47, %v1599_v37 }
 0x76c   :  { %v1603_v63 = vmul.f32 %v1600_v55, %v1441_v48  ;;  %v1601_v34 = vadd.f32 0.5, %v1598_v15 }
 0x76e   :  { %v3156_v2 = vadd.f32 %v1604_v56, %v1603_v63 }
 0x770   :  { %2603 = vtanh.f32 %v3156_v2 }
 0x77a   :  { %v2604_v35 = vpop.eup %2603 }
 0x77b   :  { %v1607_v50 = vmul.f32 %v2604_v35, %v1601_v34 }
 0x77d   :  { %1673 = vmatmul.mubr.f32.vlgmr.msra.gmra.mrb[14].mxu0 %v1607_v50  ;;  %1744 = vmatmul.mubr.f32.vlgmr.msra.gmra.mrb[14].mxu1 %v1607_v50 }
 0x77e   :  { %2468 = vmatpush3.bf16.msra.mxu0 %v2467_v45  ;;  %1935 = vmatprep.mubr.msk.f32.mxu0 %vm2642_vm1, %v2639_v4 }
 0x77f   :  { %2469 = vmatprep.subr.bf16.mxu0 %v2641_v59 }
 0x782   :  { %2471 = vmatpush3.bf16.msra.mxu0 %v2470_v62 }
 0x783   :  { %2472 = vmatprep.subr.bf16.mxu0 %v2641_v59 }
 0x786   :  { %2474 = vmatpush3.bf16.msra.mxu0 %v2473_v16 }
 0x787   :  { %2475 = vmatprep.subr.bf16.mxu0 %v2641_v59 }
 0x78a   :  { %2477 = vmatpush3.bf16.msra.mxu0 %v2476_v19 }
 0x78b   :  { %2478 = vmatprep.subr.bf16.mxu0 %v2641_v59 }
 0x78e   :  { %2480 = vmatpush3.bf16.msra.mxu0 %v2479_v27 }
 0x78f   :  { %2481 = vmatprep.subr.bf16.mxu0 %v2641_v59 }
 0x792   :  { %2483 = vmatpush3.bf16.msra.mxu0 %v2482_v31 }
 0x793   :  { %2484 = vmatprep.subr.bf16.mxu0 %v2641_v59 }
 0x796   :  { %2486 = vmatpush3.bf16.msra.mxu0 %v2485_v38 }
 0x797   :  { %2487 = vmatprep.subr.bf16.mxu0 %v2641_v59 }
 0x79a   :  { %2489 = vmatpush3.bf16.msra.mxu0 %v2488_v43 }
 0x850   :  { %v1674_v46 = vpop.f32.mrb[14].mxu0  ;;  %v1745_v49 = vpop.f32.mrb[14].mxu1 }
 0x851   :  { %v1752_v51 = vmul.f32 0.5, %v1674_v46  ;;  %v1676_v52 = vpop.f32.mrb[15].mxu0  ;;  %v1746_v53 = vpop.f32.mrb[15].mxu1 }
 0x852   :  { %v1753_v54 = vmul.f32 0.5, %v1676_v52 }
 0x853   :  { %2605 = vtanh.f32 %v1752_v51 }
 0x854   :  { %2607 = vtanh.f32 %v1753_v54 }
 0x855   :  { %2609 = vtanh.f32 %v1746_v53 }
 0x85d   :  { %v2606_v57 = vpop.eup %2605 }
 0x85e   :  { %v2608_v39 = vpop.eup %2607  ;;  %v1756_v1 = vmul.f32 0.5, %v2606_v57 }
 0x85f   :  { %v1757_v40 = vmul.f32 0.5, %v2608_v39  ;;  %v2610_v6 = vpop.eup %2609 }
 0x860   :  { %v1758_v48 = vadd.f32 0.5, %v1756_v1 }
 0x861   :  { %v1759_v7 = vadd.f32 0.5, %v1757_v40 }
 0x862   :  { %v1762_v8 = vmul.f32 %v2610_v6, %v1758_v48 }
 0x863   :  { %v1761_v9 = vmul.f32 %v1759_v7, %v3156_v2 }
 0x865   :  { %v1763_v4 = vadd.f32 %v1762_v8, %v1761_v9 }
 0x867   :  { %1936 = vmatmul.mubr.f32.vlgmr.msra.gmra.mrb[16].mxu0 %v1763_v4 }
 0x93a   :  { %v1851_v59 = vpop.f32.mrb[16].mxu0 }
 0x93b   :  { %v1852_v60 = vadd.f32 %v1885_v11, %v1851_v59  ;;  %v1937_v3 = vpop.f32.mrb[17].mxu0 }
 0x93d   :  { %1855 = vst [vmem:[%s3225_s3] sm:$0xff] %v1852_v60 }
 0x93e   :  { %1860 = vsyncpa [#allocation3], 1 }

</bundles_post_ra>
